<compile_context>
chip_gen: v6e
topology: v6e:2x2x1
jax: 0.10.0
libtpu: 0.0.40
codegen_flags: <defaults>
</compile_context>

<pallas_src>
import functools

import jax
import jax.numpy as jnp
import numpy as np
from jax.experimental import pallas as pl
from jax.experimental.pallas import tpu as pltpu

MXU_DTYPE = jnp.bfloat16  # explicit MXU-operand dtype (f32 accumulation kept)


# ----------------------------------------------------------------------------
# Pallas kernel: ONE GEGNN layer for one (batch element, node-row tile).
# ----------------------------------------------------------------------------
def gegnn_layer_kernel(hf_ref, hr_ref, e_ref, xf_ref, xr_ref, g_ref,
                       wcol_ref, bcol_ref, wrow_ref, brow_ref,
                       we_ref, be_ref, ln_ref, xw_ref, xb_ref,
                       ho_ref, eo_ref, xo_ref, num_coordinates):
    # Block shapes:
    #   hf (1,V,H) full node features      hr (1,TV,H)  this tile's node rows
    #   e  (1,TV,V,H) edge-feature rows    g  (1,TV,V)  adjacency rows
    #   xf (1,V,CD) full coordinates       xr (1,TV,CD) this tile's coord rows
    #   wcol (H,2H)=[V|A] bf16, bcol (1,2H)   wrow (H,2H)=[U|B] bf16, brow (1,2H)
    #   we (H,H) bf16, be (1,H)               ln (4,H) = (g_h, b_h, g_e, b_e)
    #   xw (H,CP) bf16 (lane-padded coord weight), xb (1,CP) (lane-padded bias)
    #   outputs: ho (1,TV,H)  eo (1,TV,V,H)  xo (1,TV,CD)
    V = hf_ref.shape[1]
    H = hf_ref.shape[2]
    TV = e_ref.shape[1]
    CD = xf_ref.shape[2]
    CP = xw_ref.shape[1]
    D = CD // num_coordinates

    h_all = hf_ref[0]                    # (V, H)
    h_rows = hr_ref[0]                   # (TV, H)
    e_t = e_ref[0]                       # (TV, V, H)
    g_t = g_ref[0]                       # (TV, V)
    x_all = xf_ref[0]                    # (V, CD)
    x_rows = xr_ref[0]                   # (TV, CD)

    # Node linears: [V|A] over all nodes (neighbour side), [U|B] over tile rows.
    ncol = jnp.dot(h_all.astype(MXU_DTYPE), wcol_ref[...],
                   preferred_element_type=jnp.float32) + bcol_ref[...]     # (V, 2H)
    nrow = jnp.dot(h_rows.astype(MXU_DTYPE), wrow_ref[...],
                   preferred_element_type=jnp.float32) + brow_ref[...]     # (TV, 2H)
    Vh, Ah = ncol[:, :H], ncol[:, H:]
    Uh, Bh = nrow[:, :H], nrow[:, H:]

    # Edge update built directly (no separate Ce temp):
    #   e_new[i, j] = Ah[j] + Bh[i] + (e[i, j] @ We + be)
    e2 = e_t.reshape(TV * V, H)
    e_new = (jnp.dot(e2.astype(MXU_DTYPE), we_ref[...],
                     preferred_element_type=jnp.float32)
             + be_ref[...]).reshape(TV, V, H)
    e_new = e_new + Ah[None, :, :] + Bh[:, None, :]

    # Gates with the graph mask folded in once; reused by the aggregation.
    gates = jax.nn.sigmoid(e_new) * g_t[:, :, None]
    agg = jnp.sum(gates * Vh[None, :, :], axis=1)                           # (TV, H)
    h_new = Uh + agg

    ln = ln_ref[...]

    def layer_norm(z, gamma, beta):
        # Single-pass LN: one sweep gives E[z] and E[z^2].
        mu = jnp.mean(z, axis=-1, keepdims=True)
        ms = jnp.mean(z * z, axis=-1, keepdims=True)
        var = ms - mu * mu
        return (z - mu) * jax.lax.rsqrt(var + 1e-5) * gamma + beta

    h_out = h_rows + jax.nn.relu(layer_norm(h_new, ln[0], ln[1]))
    e_out = e_t + jax.nn.relu(layer_norm(e_new, ln[2], ln[3]))
    ho_ref[0] = h_out
    eo_ref[0] = e_out

    # EGNN equivariant coordinate update:
    #   x_i <- x_i + (1/V) * sum_j g_ij * phi_x(e_out_ij) * (x_i - x_j)
    # phi_x for ALL channels in one lane-dense MXU matmul (the per-channel VPU
    # multiply+reduce sweep would land on the saturated VALU slot at production
    # sizes; MXU has slack there).
    phi = jnp.dot(e_out.reshape(TV * V, H).astype(MXU_DTYPE), xw_ref[...],
                  preferred_element_type=jnp.float32) + xb_ref[...]         # (TV*V, CP)
    phi = phi.reshape(TV, V, CP)

    inv_v = jnp.float32(1.0 / V)
    cols = []
    for c in range(num_coordinates):                                        # static, small
        wc = phi[:, :, c] * g_t                                             # (TV, V)
        xc_all = x_all[:, c * D:(c + 1) * D]                                # (V, D)
        xc_rows = x_rows[:, c * D:(c + 1) * D]                              # (TV, D)
        wsum = jnp.sum(wc, axis=1, keepdims=True)                           # (TV, 1)
        mix = jnp.dot(wc.astype(MXU_DTYPE), xc_all.astype(MXU_DTYPE),
                      preferred_element_type=jnp.float32)                   # (TV, D)
        cols.append(xc_rows + (xc_rows * wsum - mix) * inv_v)
    xo_ref[0] = cols[0] if num_coordinates == 1 else jnp.concatenate(cols, axis=-1)


# ----------------------------------------------------------------------------
# Wrapper helpers.
# ----------------------------------------------------------------------------
def _round_up(n, m):
    return ((n + m - 1) // m) * m


def _pick_row_tile(V, H, max_bytes=4 << 20):
    """Largest TV (multiple of 8, dividing V) whose f32 e row-block fits max_bytes."""
    if V % 8 != 0:
        return V                       # tiny/odd graphs: one full block per batch elem
    tv = 8
    for cand in range(8, V + 1, 8):
        if V % cand == 0 and cand * V * H * 4 <= max_bytes:
            tv = cand
    return tv


def _vmem_limit_bytes(V, TV, H, CD, CP, weight_bytes):
    """Scoped-VMEM limit derived from block sizes, capped per TPU generation."""
    eblk = TV * V * H * 4
    small = (V * H + V * CD + TV * H + TV * CD + TV * V) * 4
    # e in + e out double-buffered, plus headroom for the f32 in-kernel
    # temporaries (e_new, gates, e_out, phi) and the small blocks / weights.
    est = (4 * eblk + 6 * eblk + TV * V * CP * 4 + 4 * small
           + weight_bytes + (4 << 20))
    kind = jax.devices()[0].device_kind.lower()
    cap = (56 << 20) if "v7" in kind else (100 << 20)   # v7x has 64 MiB physical VMEM
    return int(min(max(est, 16 << 20), cap))


def _pack_layer(params, num_coordinates):
    """Repack one layer's params into kernel-friendly (lane-dense, bf16-MXU) layout."""
    W, bvec, ln, xw, xb = params
    H = W.shape[-1]
    CP = _round_up(max(num_coordinates, 1), 128)
    wcol = jnp.concatenate([W[1], W[2]], axis=1).astype(MXU_DTYPE)       # [V|A]
    bcol = jnp.concatenate([bvec[1], bvec[2]])[None, :].astype(jnp.float32)
    wrow = jnp.concatenate([W[0], W[3]], axis=1).astype(MXU_DTYPE)       # [U|B]
    brow = jnp.concatenate([bvec[0], bvec[3]])[None, :].astype(jnp.float32)
    we = W[4].astype(MXU_DTYPE)
    be = bvec[4][None, :].astype(jnp.float32)
    xw_pad = jnp.zeros((H, CP), MXU_DTYPE).at[:, :num_coordinates].set(
        xw.astype(MXU_DTYPE))
    xb_pad = jnp.zeros((1, CP), jnp.float32).at[0, :num_coordinates].set(xb[0])
    return (wcol, bcol, wrow, brow, we, be, ln.astype(jnp.float32), xw_pad, xb_pad)


def gegnn_layer(h, e, x, graph, packed, num_coordinates, tv):
    B, V, H = h.shape
    CD = x.shape[-1]
    CP = packed[7].shape[1]
    R = V // tv
    weight_bytes = sum(int(np.prod(w.shape)) * w.dtype.itemsize for w in packed)

    const_map = lambda b, r: (0, 0)
    w_specs = [pl.BlockSpec(tuple(w.shape), const_map, pipeline_mode=pl.Buffered(1))
               for w in packed]

    kernel = functools.partial(gegnn_layer_kernel, num_coordinates=num_coordinates)
    return pl.pallas_call(
        kernel,
        out_shape=(
            jax.ShapeDtypeStruct((B, V, H), jnp.float32),
            jax.ShapeDtypeStruct((B, V, V, H), jnp.float32),
            jax.ShapeDtypeStruct((B, V, CD), jnp.float32),
        ),
        grid=(B, R),
        in_specs=[
            pl.BlockSpec((1, V, H), lambda b, r: (b, 0, 0)),          # h, all nodes
            pl.BlockSpec((1, tv, H), lambda b, r: (b, r, 0)),         # h, tile rows
            pl.BlockSpec((1, tv, V, H), lambda b, r: (b, r, 0, 0)),   # e row tile
            pl.BlockSpec((1, V, CD), lambda b, r: (b, 0, 0)),         # x, all nodes
            pl.BlockSpec((1, tv, CD), lambda b, r: (b, r, 0)),        # x, tile rows
            pl.BlockSpec((1, tv, V), lambda b, r: (b, r, 0)),         # graph row tile
        ] + w_specs,
        out_specs=(
            pl.BlockSpec((1, tv, H), lambda b, r: (b, r, 0)),
            pl.BlockSpec((1, tv, V, H), lambda b, r: (b, r, 0, 0)),
            pl.BlockSpec((1, tv, CD), lambda b, r: (b, r, 0)),
        ),
        compiler_params=pltpu.CompilerParams(
            dimension_semantics=("parallel", "parallel"),
            vmem_limit_bytes=_vmem_limit_bytes(V, tv, H, CD, CP, weight_bytes),
        ),
    )(h, h, e, x, x, graph, *packed)


def egnn_net(h, e, x, graph, layer_params, num_coordinates=None, tv=None):
    B, V, H = h.shape
    if num_coordinates is None:
        num_coordinates = layer_params[0][3].shape[1]
    if tv is None:
        tv = _pick_row_tile(V, H)
    assert V % tv == 0 and (tv % 8 == 0 or tv == V)
    for params in layer_params:
        packed = _pack_layer(params, num_coordinates)
        h, e, x = gegnn_layer(h, e, x, graph, packed, num_coordinates, tv)
    return h, e, x


# ----------------------------------------------------------------------------
# Pure-JAX reference (same math).  mxu_dtype=None -> module's plain-f32 path;
# mxu_dtype=bf16 -> the same explicit MXU-operand casts the kernel uses.
# ----------------------------------------------------------------------------
def gegnn_layer_ref(h, e, x, g, params, mxu_dtype=None):
    W, bvec, ln, xw, xb = params
    Bsz, V, H = h.shape
    C = xw.shape[1]
    D = x.shape[-1] // C

    def mm(a, b):
        if mxu_dtype is not None:
            a = a.astype(mxu_dtype)
            b = b.astype(mxu_dtype)
        return jnp.matmul(a, b, preferred_element_type=jnp.float32)

    Uh = mm(h, W[0]) + bvec[0]
    Vh = mm(h, W[1]) + bvec[1]
    Ah = mm(h, W[2]) + bvec[2]
    Bh = mm(h, W[3]) + bvec[3]
    Ce = mm(e, W[4]) + bvec[4]
    e_new = Ah[:, None, :, :] + Bh[:, :, None, :] + Ce
    gates = jax.nn.sigmoid(e_new)
    agg = jnp.sum(gates * Vh[:, None, :, :] * g[..., None], axis=2)
    h_new = Uh + agg

    def lnorm(z, gamma, beta):
        mu = z.mean(-1, keepdims=True)
        var = ((z - mu) ** 2).mean(-1, keepdims=True)
        return (z - mu) * jax.lax.rsqrt(var + 1e-5) * gamma + beta

    h_out = h + jax.nn.relu(lnorm(h_new, ln[0], ln[1]))
    e_out = e + jax.nn.relu(lnorm(e_new, ln[2], ln[3]))

    w = (mm(e_out, xw) + xb[0]) * g[..., None]            # (B,V,V,C)
    x3 = x.reshape(Bsz, V, C, D)
    diff = x3[:, :, None] - x3[:, None, :]                # (B,V,V,C,D)
    upd = jnp.sum(diff * w[..., None], axis=2) / V
    x_out = (x3 + upd).reshape(Bsz, V, C * D)
    return h_out, e_out, x_out


def egnn_net_ref(h, e, x, graph, layer_params, mxu_dtype=None):
    for params in layer_params:
        h, e, x = gegnn_layer_ref(h, e, x, graph, params, mxu_dtype=mxu_dtype)
    return h, e, x


# ----------------------------------------------------------------------------
# Deterministic parameter init (PyTorch-Linear-style uniform, LN affine).
# ----------------------------------------------------------------------------
def init_layer_params(key, H, C):
    k0, k1, k2, k3 = jax.random.split(key, 4)
    bound = 1.0 / np.sqrt(H)
    W = jax.random.uniform(k0, (5, H, H), jnp.float32, -bound, bound)
    bvec = jax.random.uniform(k1, (5, H), jnp.float32, -bound, bound)
    ln = jnp.stack([jnp.ones(H), jnp.zeros(H), jnp.ones(H), jnp.zeros(H)],
                   axis=0).astype(jnp.float32)
    xw = jax.random.uniform(k2, (H, C), jnp.float32, -bound, bound)
    xb = jax.random.uniform(k3, (1, C), jnp.float32, -bound, bound)
    return (W, bvec, ln, xw, xb)


if __name__ == "__main__":
    N_LAYERS = 3
    B, V, H = 2, 16, 32          # batch, nodes, hidden_dim (V=16 -> two 8-row tiles)
    NUM_COORD, COORD_DIM = 1, 2  # num_coordinates channels of 2-D coordinates

    key = jax.random.PRNGKey(0)
    kh, ke, kx, kg, kp = jax.random.split(key, 5)

    h = jax.random.normal(kh, (B, V, H), jnp.float32)
    e = jax.random.normal(ke, (B, V, V, H), jnp.float32)
    x = jax.random.normal(kx, (B, V, NUM_COORD * COORD_DIM), jnp.float32)

    adj = jax.random.bernoulli(kg, 0.5, (B, V, V))
    adj = jnp.logical_or(adj, jnp.swapaxes(adj, 1, 2))
    adj = jnp.logical_and(adj, ~jnp.eye(V, dtype=bool)[None])
    graph = adj.astype(jnp.float32)

    layer_keys = jax.random.split(kp, N_LAYERS)
    layer_params = [init_layer_params(k, H, NUM_COORD) for k in layer_keys]

    # tv=8 -> grid=(B=2, row_tiles=2): exercises the row-tiled edge path.
    h_out, e_out, x_out = egnn_net(h, e, x, graph, layer_params, tv=8)
    jax.block_until_ready((h_out, e_out, x_out))

    # (1) Implementation check vs a reference that uses the SAME explicit bf16
    #     MXU-operand casts (tight tolerance -> validates the kernel itself).
    h_m, e_m, x_m = egnn_net_ref(h, e, x, graph, layer_params, mxu_dtype=MXU_DTYPE)
    np.testing.assert_allclose(np.asarray(h_out), np.asarray(h_m), rtol=5e-3, atol=5e-3)
    np.testing.assert_allclose(np.asarray(e_out), np.asarray(e_m), rtol=5e-3, atol=5e-3)
    np.testing.assert_allclose(np.asarray(x_out), np.asarray(x_m), rtol=5e-3, atol=5e-3)

    # (2) Numerics sanity vs the plain-f32 module semantics: bounds the explicit
    #     bf16-MXU deviation over the 3-layer residual stack.
    h_f, e_f, x_f = egnn_net_ref(h, e, x, graph, layer_params, mxu_dtype=None)
    np.testing.assert_allclose(np.asarray(h_out), np.asarray(h_f), rtol=5e-2, atol=5e-2)
    np.testing.assert_allclose(np.asarray(e_out), np.asarray(e_f), rtol=5e-2, atol=5e-2)
    np.testing.assert_allclose(np.asarray(x_out), np.asarray(x_f), rtol=5e-2, atol=5e-2)

    print("KERNEL_OK")
</pallas_src>

<mosaic_0001>
module attributes {stable_mosaic.version = 11 : i64} {
  func.func @gegnn_layer_kernel(%arg0: i32, %arg1: i32, %arg2: memref<1x16x32xf32, #tpu.memory_space<vmem>>, %arg3: memref<1x8x32xf32, #tpu.memory_space<vmem>>, %arg4: memref<1x8x16x32xf32, #tpu.memory_space<vmem>>, %arg5: memref<1x16x2xf32, #tpu.memory_space<vmem>>, %arg6: memref<1x8x2xf32, #tpu.memory_space<vmem>>, %arg7: memref<1x8x16xf32, #tpu.memory_space<vmem>>, %arg8: memref<32x64xbf16, #tpu.memory_space<vmem>>, %arg9: memref<1x64xf32, #tpu.memory_space<vmem>>, %arg10: memref<32x64xbf16, #tpu.memory_space<vmem>>, %arg11: memref<1x64xf32, #tpu.memory_space<vmem>>, %arg12: memref<32x32xbf16, #tpu.memory_space<vmem>>, %arg13: memref<1x32xf32, #tpu.memory_space<vmem>>, %arg14: memref<4x32xf32, #tpu.memory_space<vmem>>, %arg15: memref<32x128xbf16, #tpu.memory_space<vmem>>, %arg16: memref<1x128xf32, #tpu.memory_space<vmem>>, %arg17: memref<1x8x32xf32, #tpu.memory_space<vmem>>, %arg18: memref<1x8x16x32xf32, #tpu.memory_space<vmem>>, %arg19: memref<1x8x2xf32, #tpu.memory_space<vmem>>) attributes {dimension_semantics = [#tpu.dimension_semantics<parallel>, #tpu.dimension_semantics<parallel>], iteration_bounds = array<i64: 2, 2>, scalar_prefetch = 0 : i64, scratch_operands = 0 : i64, tpu.core_type = #tpu.core_type<tc>, window_params = [{transform_indices = @transform_0, window_bounds = array<i64: 1, 16, 32>}, {transform_indices = @transform_1, window_bounds = array<i64: 1, 8, 32>}, {transform_indices = @transform_2, window_bounds = array<i64: 1, 8, 16, 32>}, {transform_indices = @transform_3, window_bounds = array<i64: 1, 16, 2>}, {transform_indices = @transform_4, window_bounds = array<i64: 1, 8, 2>}, {transform_indices = @transform_5, window_bounds = array<i64: 1, 8, 16>}, {pipeline_mode = #tpu.pipeline_mode<synchronous>, transform_indices = @transform_6, window_bounds = array<i64: 32, 64>}, {pipeline_mode = #tpu.pipeline_mode<synchronous>, transform_indices = @transform_7, window_bounds = array<i64: 1, 64>}, {pipeline_mode = #tpu.pipeline_mode<synchronous>, transform_indices = @transform_8, window_bounds = array<i64: 32, 64>}, {pipeline_mode = #tpu.pipeline_mode<synchronous>, transform_indices = @transform_9, window_bounds = array<i64: 1, 64>}, {pipeline_mode = #tpu.pipeline_mode<synchronous>, transform_indices = @transform_10, window_bounds = array<i64: 32, 32>}, {pipeline_mode = #tpu.pipeline_mode<synchronous>, transform_indices = @transform_11, window_bounds = array<i64: 1, 32>}, {pipeline_mode = #tpu.pipeline_mode<synchronous>, transform_indices = @transform_12, window_bounds = array<i64: 4, 32>}, {pipeline_mode = #tpu.pipeline_mode<synchronous>, transform_indices = @transform_13, window_bounds = array<i64: 32, 128>}, {pipeline_mode = #tpu.pipeline_mode<synchronous>, transform_indices = @transform_14, window_bounds = array<i64: 1, 128>}, {transform_indices = @transform_15, window_bounds = array<i64: 1, 8, 32>}, {transform_indices = @transform_16, window_bounds = array<i64: 1, 8, 16, 32>}, {transform_indices = @transform_17, window_bounds = array<i64: 1, 8, 2>}]} {
    %c0 = arith.constant 0 : index
    %c0_0 = arith.constant 0 : index
    %c0_1 = arith.constant 0 : index
    %0 = vector.load %arg2[%c0, %c0_0, %c0_1] : memref<1x16x32xf32, #tpu.memory_space<vmem>>, vector<1x16x32xf32>
    %1 = vector.shape_cast %0 : vector<1x16x32xf32> to vector<16x32xf32>
    %c0_2 = arith.constant 0 : index
    %c0_3 = arith.constant 0 : index
    %c0_4 = arith.constant 0 : index
    %2 = vector.load %arg3[%c0_2, %c0_3, %c0_4] : memref<1x8x32xf32, #tpu.memory_space<vmem>>, vector<1x8x32xf32>
    %3 = vector.shape_cast %2 : vector<1x8x32xf32> to vector<8x32xf32>
    %c0_5 = arith.constant 0 : index
    %c0_6 = arith.constant 0 : index
    %c0_7 = arith.constant 0 : index
    %c0_8 = arith.constant 0 : index
    %4 = vector.load %arg4[%c0_5, %c0_6, %c0_7, %c0_8] : memref<1x8x16x32xf32, #tpu.memory_space<vmem>>, vector<1x8x16x32xf32>
    %5 = vector.shape_cast %4 : vector<1x8x16x32xf32> to vector<8x16x32xf32>
    %c0_9 = arith.constant 0 : index
    %c0_10 = arith.constant 0 : index
    %c0_11 = arith.constant 0 : index
    %6 = vector.load %arg7[%c0_9, %c0_10, %c0_11] : memref<1x8x16xf32, #tpu.memory_space<vmem>>, vector<1x8x16xf32>
    %7 = vector.shape_cast %6 : vector<1x8x16xf32> to vector<8x16xf32>
    %c0_12 = arith.constant 0 : index
    %c0_13 = arith.constant 0 : index
    %c0_14 = arith.constant 0 : index
    %8 = vector.load %arg5[%c0_12, %c0_13, %c0_14] : memref<1x16x2xf32, #tpu.memory_space<vmem>>, vector<1x16x2xf32>
    %9 = vector.shape_cast %8 : vector<1x16x2xf32> to vector<16x2xf32>
    %c0_15 = arith.constant 0 : index
    %c0_16 = arith.constant 0 : index
    %c0_17 = arith.constant 0 : index
    %10 = vector.load %arg6[%c0_15, %c0_16, %c0_17] : memref<1x8x2xf32, #tpu.memory_space<vmem>>, vector<1x8x2xf32>
    %11 = vector.shape_cast %10 : vector<1x8x2xf32> to vector<8x2xf32>
    %12 = arith.truncf %1 : vector<16x32xf32> to vector<16x32xbf16>
    %c0_18 = arith.constant 0 : index
    %c0_19 = arith.constant 0 : index
    %13 = vector.load %arg8[%c0_18, %c0_19] : memref<32x64xbf16, #tpu.memory_space<vmem>>, vector<32x64xbf16>
    %cst = arith.constant dense<0.000000e+00> : vector<16x64xf32>
    %14 = tpu.matmul %12, %13, %cst {dimension_numbers = #tpu.dot_dimension_numbers<[1], [0], [0], [1], [0, 0, 1, 1], [], []>} : vector<16x32xbf16>, vector<32x64xbf16>, vector<16x64xf32> -> vector<16x64xf32>
    %c0_20 = arith.constant 0 : index
    %c0_21 = arith.constant 0 : index
    %15 = vector.load %arg9[%c0_20, %c0_21] : memref<1x64xf32, #tpu.memory_space<vmem>>, vector<1x64xf32>
    %16 = vector.broadcast %15 : vector<1x64xf32> to vector<16x64xf32>
    %17 = arith.addf %14, %16 : vector<16x64xf32>
    %18 = arith.truncf %3 : vector<8x32xf32> to vector<8x32xbf16>
    %c0_22 = arith.constant 0 : index
    %c0_23 = arith.constant 0 : index
    %19 = vector.load %arg10[%c0_22, %c0_23] : memref<32x64xbf16, #tpu.memory_space<vmem>>, vector<32x64xbf16>
    %cst_24 = arith.constant dense<0.000000e+00> : vector<8x64xf32>
    %20 = tpu.matmul %18, %19, %cst_24 {dimension_numbers = #tpu.dot_dimension_numbers<[1], [0], [0], [1], [0, 0, 1, 1], [], []>} : vector<8x32xbf16>, vector<32x64xbf16>, vector<8x64xf32> -> vector<8x64xf32>
    %c0_25 = arith.constant 0 : index
    %c0_26 = arith.constant 0 : index
    %21 = vector.load %arg11[%c0_25, %c0_26] : memref<1x64xf32, #tpu.memory_space<vmem>>, vector<1x64xf32>
    %22 = vector.broadcast %21 : vector<1x64xf32> to vector<8x64xf32>
    %23 = arith.addf %20, %22 : vector<8x64xf32>
    %24 = vector.extract_strided_slice %17 {offsets = [0, 0], sizes = [16, 32], strides = [1, 1]} : vector<16x64xf32> to vector<16x32xf32>
    %25 = vector.extract_strided_slice %17 {offsets = [0, 32], sizes = [16, 32], strides = [1, 1]} : vector<16x64xf32> to vector<16x32xf32>
    %26 = vector.extract_strided_slice %23 {offsets = [0, 0], sizes = [8, 32], strides = [1, 1]} : vector<8x64xf32> to vector<8x32xf32>
    %27 = vector.extract_strided_slice %23 {offsets = [0, 32], sizes = [8, 32], strides = [1, 1]} : vector<8x64xf32> to vector<8x32xf32>
    %28 = vector.shape_cast %5 : vector<8x16x32xf32> to vector<128x32xf32>
    %29 = arith.truncf %28 : vector<128x32xf32> to vector<128x32xbf16>
    %c0_27 = arith.constant 0 : index
    %c0_28 = arith.constant 0 : index
    %30 = vector.load %arg12[%c0_27, %c0_28] : memref<32x32xbf16, #tpu.memory_space<vmem>>, vector<32x32xbf16>
    %cst_29 = arith.constant dense<0.000000e+00> : vector<128x32xf32>
    %31 = tpu.matmul %29, %30, %cst_29 {dimension_numbers = #tpu.dot_dimension_numbers<[1], [0], [0], [1], [0, 0, 1, 1], [], []>} : vector<128x32xbf16>, vector<32x32xbf16>, vector<128x32xf32> -> vector<128x32xf32>
    %c0_30 = arith.constant 0 : index
    %c0_31 = arith.constant 0 : index
    %32 = vector.load %arg13[%c0_30, %c0_31] : memref<1x32xf32, #tpu.memory_space<vmem>>, vector<1x32xf32>
    %33 = vector.broadcast %32 : vector<1x32xf32> to vector<128x32xf32>
    %34 = arith.addf %31, %33 : vector<128x32xf32>
    %35 = vector.shape_cast %34 : vector<128x32xf32> to vector<8x16x32xf32>
    %36 = vector.shape_cast %25 : vector<16x32xf32> to vector<1x16x32xf32>
    %37 = vector.broadcast %36 : vector<1x16x32xf32> to vector<8x16x32xf32>
    %38 = arith.addf %35, %37 : vector<8x16x32xf32>
    %39 = vector.shape_cast %27 : vector<8x32xf32> to vector<8x1x32xf32>
    %40 = vector.broadcast %39 : vector<8x1x32xf32> to vector<8x16x32xf32>
    %41 = arith.addf %38, %40 : vector<8x16x32xf32>
    %42 = arith.negf %41 : vector<8x16x32xf32>
    %43 = math.exp %42 : vector<8x16x32xf32>
    %cst_32 = arith.constant 1.000000e+00 : f32
    %44 = vector.broadcast %cst_32 : f32 to vector<8x16x32xf32>
    %45 = arith.addf %44, %43 : vector<8x16x32xf32>
    %46 = arith.divf %44, %45 : vector<8x16x32xf32>
    %47 = vector.shape_cast %7 : vector<8x16xf32> to vector<8x16x1xf32>
    %48 = vector.broadcast %47 : vector<8x16x1xf32> to vector<8x16x32xf32>
    %49 = arith.mulf %46, %48 : vector<8x16x32xf32>
    %50 = vector.shape_cast %24 : vector<16x32xf32> to vector<1x16x32xf32>
    %51 = vector.broadcast %50 : vector<1x16x32xf32> to vector<8x16x32xf32>
    %52 = arith.mulf %49, %51 : vector<8x16x32xf32>
    %cst_33 = arith.constant dense<0.000000e+00> : vector<8x32xf32>
    %53 = vector.multi_reduction <add>, %52, %cst_33 [1] : vector<8x16x32xf32> to vector<8x32xf32>
    %54 = arith.addf %26, %53 : vector<8x32xf32>
    %c0_34 = arith.constant 0 : index
    %c0_35 = arith.constant 0 : index
    %55 = vector.load %arg14[%c0_34, %c0_35] : memref<4x32xf32, #tpu.memory_space<vmem>>, vector<4x32xf32>
    %56 = vector.extract_strided_slice %55 {offsets = [0, 0], sizes = [1, 32], strides = [1, 1]} : vector<4x32xf32> to vector<1x32xf32>
    %57 = vector.shape_cast %56 : vector<1x32xf32> to vector<32xf32>
    %58 = vector.extract_strided_slice %55 {offsets = [1, 0], sizes = [1, 32], strides = [1, 1]} : vector<4x32xf32> to vector<1x32xf32>
    %59 = vector.shape_cast %58 : vector<1x32xf32> to vector<32xf32>
    %cst_36 = arith.constant dense<0.000000e+00> : vector<8xf32>
    %60 = vector.multi_reduction <add>, %54, %cst_36 [1] : vector<8x32xf32> to vector<8xf32>
    %61 = vector.shape_cast %60 : vector<8xf32> to vector<8x1xf32>
    %cst_37 = arith.constant 3.200000e+01 : f32
    %62 = vector.broadcast %cst_37 : f32 to vector<8x1xf32>
    %63 = arith.divf %61, %62 : vector<8x1xf32>
    %64 = arith.mulf %54, %54 : vector<8x32xf32>
    %cst_38 = arith.constant dense<0.000000e+00> : vector<8xf32>
    %65 = vector.multi_reduction <add>, %64, %cst_38 [1] : vector<8x32xf32> to vector<8xf32>
    %66 = vector.shape_cast %65 : vector<8xf32> to vector<8x1xf32>
    %cst_39 = arith.constant 3.200000e+01 : f32
    %67 = vector.broadcast %cst_39 : f32 to vector<8x1xf32>
    %68 = arith.divf %66, %67 : vector<8x1xf32>
    %69 = arith.mulf %63, %63 : vector<8x1xf32>
    %70 = arith.subf %68, %69 : vector<8x1xf32>
    %71 = vector.broadcast %63 : vector<8x1xf32> to vector<8x32xf32>
    %72 = arith.subf %54, %71 : vector<8x32xf32>
    %cst_40 = arith.constant 9.99999974E-6 : f32
    %73 = vector.broadcast %cst_40 : f32 to vector<8x1xf32>
    %74 = arith.addf %70, %73 : vector<8x1xf32>
    %75 = math.rsqrt %74 : vector<8x1xf32>
    %76 = vector.broadcast %75 : vector<8x1xf32> to vector<8x32xf32>
    %77 = arith.mulf %72, %76 : vector<8x32xf32>
    %78 = vector.shape_cast %57 : vector<32xf32> to vector<1x32xf32>
    %79 = vector.broadcast %78 : vector<1x32xf32> to vector<8x32xf32>
    %80 = arith.mulf %77, %79 : vector<8x32xf32>
    %81 = vector.shape_cast %59 : vector<32xf32> to vector<1x32xf32>
    %82 = vector.broadcast %81 : vector<1x32xf32> to vector<8x32xf32>
    %83 = arith.addf %80, %82 : vector<8x32xf32>
    %cst_41 = arith.constant 0.000000e+00 : f32
    %84 = vector.broadcast %cst_41 : f32 to vector<8x32xf32>
    %85 = arith.maximumf %83, %84 : vector<8x32xf32>
    %86 = arith.addf %3, %85 : vector<8x32xf32>
    %87 = vector.extract_strided_slice %55 {offsets = [2, 0], sizes = [1, 32], strides = [1, 1]} : vector<4x32xf32> to vector<1x32xf32>
    %88 = vector.shape_cast %87 : vector<1x32xf32> to vector<32xf32>
    %89 = vector.extract_strided_slice %55 {offsets = [3, 0], sizes = [1, 32], strides = [1, 1]} : vector<4x32xf32> to vector<1x32xf32>
    %90 = vector.shape_cast %89 : vector<1x32xf32> to vector<32xf32>
    %cst_42 = arith.constant dense<0.000000e+00> : vector<8x16xf32>
    %91 = vector.multi_reduction <add>, %41, %cst_42 [2] : vector<8x16x32xf32> to vector<8x16xf32>
    %92 = vector.shape_cast %91 : vector<8x16xf32> to vector<8x16x1xf32>
    %cst_43 = arith.constant 3.200000e+01 : f32
    %93 = vector.broadcast %cst_43 : f32 to vector<8x16x1xf32>
    %94 = arith.divf %92, %93 : vector<8x16x1xf32>
    %95 = arith.mulf %41, %41 : vector<8x16x32xf32>
    %cst_44 = arith.constant dense<0.000000e+00> : vector<8x16xf32>
    %96 = vector.multi_reduction <add>, %95, %cst_44 [2] : vector<8x16x32xf32> to vector<8x16xf32>
    %97 = vector.shape_cast %96 : vector<8x16xf32> to vector<8x16x1xf32>
    %cst_45 = arith.constant 3.200000e+01 : f32
    %98 = vector.broadcast %cst_45 : f32 to vector<8x16x1xf32>
    %99 = arith.divf %97, %98 : vector<8x16x1xf32>
    %100 = arith.mulf %94, %94 : vector<8x16x1xf32>
    %101 = arith.subf %99, %100 : vector<8x16x1xf32>
    %102 = vector.broadcast %94 : vector<8x16x1xf32> to vector<8x16x32xf32>
    %103 = arith.subf %41, %102 : vector<8x16x32xf32>
    %cst_46 = arith.constant 9.99999974E-6 : f32
    %104 = vector.broadcast %cst_46 : f32 to vector<8x16x1xf32>
    %105 = arith.addf %101, %104 : vector<8x16x1xf32>
    %106 = math.rsqrt %105 : vector<8x16x1xf32>
    %107 = vector.broadcast %106 : vector<8x16x1xf32> to vector<8x16x32xf32>
    %108 = arith.mulf %103, %107 : vector<8x16x32xf32>
    %109 = vector.shape_cast %88 : vector<32xf32> to vector<1x1x32xf32>
    %110 = vector.broadcast %109 : vector<1x1x32xf32> to vector<8x16x32xf32>
    %111 = arith.mulf %108, %110 : vector<8x16x32xf32>
    %112 = vector.shape_cast %90 : vector<32xf32> to vector<1x1x32xf32>
    %113 = vector.broadcast %112 : vector<1x1x32xf32> to vector<8x16x32xf32>
    %114 = arith.addf %111, %113 : vector<8x16x32xf32>
    %cst_47 = arith.constant 0.000000e+00 : f32
    %115 = vector.broadcast %cst_47 : f32 to vector<8x16x32xf32>
    %116 = arith.maximumf %114, %115 : vector<8x16x32xf32>
    %117 = arith.addf %5, %116 : vector<8x16x32xf32>
    %c0_48 = arith.constant 0 : index
    %c0_49 = arith.constant 0 : index
    %c0_50 = arith.constant 0 : index
    %118 = vector.load %arg17[%c0_48, %c0_49, %c0_50] : memref<1x8x32xf32, #tpu.memory_space<vmem>>, vector<1x8x32xf32>
    %119 = vector.shape_cast %118 : vector<1x8x32xf32> to vector<8x32xf32>
    %120 = vector.shape_cast %86 : vector<8x32xf32> to vector<1x8x32xf32>
    tpu.vector_store %arg17[%c0_48, %c0_49, %c0_50], %120 {strides = array<i32>} : memref<1x8x32xf32, #tpu.memory_space<vmem>>, vector<1x8x32xf32>,
    %c0_51 = arith.constant 0 : index
    %c0_52 = arith.constant 0 : index
    %c0_53 = arith.constant 0 : index
    %c0_54 = arith.constant 0 : index
    %121 = vector.load %arg18[%c0_51, %c0_52, %c0_53, %c0_54] : memref<1x8x16x32xf32, #tpu.memory_space<vmem>>, vector<1x8x16x32xf32>
    %122 = vector.shape_cast %121 : vector<1x8x16x32xf32> to vector<8x16x32xf32>
    %123 = vector.shape_cast %117 : vector<8x16x32xf32> to vector<1x8x16x32xf32>
    tpu.vector_store %arg18[%c0_51, %c0_52, %c0_53, %c0_54], %123 {strides = array<i32>} : memref<1x8x16x32xf32, #tpu.memory_space<vmem>>, vector<1x8x16x32xf32>,
    %124 = vector.shape_cast %117 : vector<8x16x32xf32> to vector<128x32xf32>
    %125 = arith.truncf %124 : vector<128x32xf32> to vector<128x32xbf16>
    %c0_55 = arith.constant 0 : index
    %c0_56 = arith.constant 0 : index
    %126 = vector.load %arg15[%c0_55, %c0_56] : memref<32x128xbf16, #tpu.memory_space<vmem>>, vector<32x128xbf16>
    %cst_57 = arith.constant dense<0.000000e+00> : vector<128x128xf32>
    %127 = tpu.matmul %125, %126, %cst_57 {dimension_numbers = #tpu.dot_dimension_numbers<[1], [0], [0], [1], [0, 0, 1, 1], [], []>} : vector<128x32xbf16>, vector<32x128xbf16>, vector<128x128xf32> -> vector<128x128xf32>
    %c0_58 = arith.constant 0 : index
    %c0_59 = arith.constant 0 : index
    %128 = vector.load %arg16[%c0_58, %c0_59] : memref<1x128xf32, #tpu.memory_space<vmem>>, vector<1x128xf32>
    %129 = vector.broadcast %128 : vector<1x128xf32> to vector<128x128xf32>
    %130 = arith.addf %127, %129 : vector<128x128xf32>
    %131 = vector.shape_cast %130 : vector<128x128xf32> to vector<8x16x128xf32>
    %132 = vector.extract_strided_slice %131 {offsets = [0, 0, 0], sizes = [8, 16, 1], strides = [1, 1, 1]} : vector<8x16x128xf32> to vector<8x16x1xf32>
    %133 = vector.shape_cast %132 : vector<8x16x1xf32> to vector<8x16xf32>
    %134 = arith.mulf %133, %7 : vector<8x16xf32>
    %cst_60 = arith.constant dense<0.000000e+00> : vector<8xf32>
    %135 = vector.multi_reduction <add>, %134, %cst_60 [1] : vector<8x16xf32> to vector<8xf32>
    %136 = vector.shape_cast %135 : vector<8xf32> to vector<8x1xf32>
    %137 = arith.truncf %134 : vector<8x16xf32> to vector<8x16xbf16>
    %138 = arith.truncf %9 : vector<16x2xf32> to vector<16x2xbf16>
    %cst_61 = arith.constant dense<0.000000e+00> : vector<8x2xf32>
    %139 = tpu.matmul %137, %138, %cst_61 {dimension_numbers = #tpu.dot_dimension_numbers<[1], [0], [0], [1], [0, 0, 1, 1], [], []>} : vector<8x16xbf16>, vector<16x2xbf16>, vector<8x2xf32> -> vector<8x2xf32>
    %140 = vector.broadcast %136 : vector<8x1xf32> to vector<8x2xf32>
    %141 = arith.mulf %11, %140 : vector<8x2xf32>
    %142 = arith.subf %141, %139 : vector<8x2xf32>
    %cst_62 = arith.constant 6.250000e-02 : f32
    %143 = vector.broadcast %cst_62 : f32 to vector<8x2xf32>
    %144 = arith.mulf %142, %143 : vector<8x2xf32>
    %145 = arith.addf %11, %144 : vector<8x2xf32>
    %c0_63 = arith.constant 0 : index
    %c0_64 = arith.constant 0 : index
    %c0_65 = arith.constant 0 : index
    %146 = vector.load %arg19[%c0_63, %c0_64, %c0_65] : memref<1x8x2xf32, #tpu.memory_space<vmem>>, vector<1x8x2xf32>
    %147 = vector.shape_cast %146 : vector<1x8x2xf32> to vector<8x2xf32>
    %148 = vector.shape_cast %145 : vector<8x2xf32> to vector<1x8x2xf32>
    tpu.vector_store %arg19[%c0_63, %c0_64, %c0_65], %148 {strides = array<i32>} : memref<1x8x2xf32, #tpu.memory_space<vmem>>, vector<1x8x2xf32>,
    return
  }
  func.func @transform_0(%arg0: i32, %arg1: i32) -> (i32, i32, i32) {
    %c0_i32 = arith.constant 0 : i32
    %c0_i32_0 = arith.constant 0 : i32
    %c0_i32_1 = arith.constant 0 : i32
    return %arg0, %c0_i32, %c0_i32_0 : i32, i32, i32
  }
  func.func @transform_1(%arg0: i32, %arg1: i32) -> (i32, i32, i32) {
    %c0_i32 = arith.constant 0 : i32
    %c0_i32_0 = arith.constant 0 : i32
    return %arg0, %arg1, %c0_i32 : i32, i32, i32
  }
  func.func @transform_2(%arg0: i32, %arg1: i32) -> (i32, i32, i32, i32) {
    %c0_i32 = arith.constant 0 : i32
    %c0_i32_0 = arith.constant 0 : i32
    %c0_i32_1 = arith.constant 0 : i32
    return %arg0, %arg1, %c0_i32, %c0_i32_0 : i32, i32, i32, i32
  }
  func.func @transform_3(%arg0: i32, %arg1: i32) -> (i32, i32, i32) {
    %c0_i32 = arith.constant 0 : i32
    %c0_i32_0 = arith.constant 0 : i32
    %c0_i32_1 = arith.constant 0 : i32
    return %arg0, %c0_i32, %c0_i32_0 : i32, i32, i32
  }
  func.func @transform_4(%arg0: i32, %arg1: i32) -> (i32, i32, i32) {
    %c0_i32 = arith.constant 0 : i32
    %c0_i32_0 = arith.constant 0 : i32
    return %arg0, %arg1, %c0_i32 : i32, i32, i32
  }
  func.func @transform_5(%arg0: i32, %arg1: i32) -> (i32, i32, i32) {
    %c0_i32 = arith.constant 0 : i32
    %c0_i32_0 = arith.constant 0 : i32
    return %arg0, %arg1, %c0_i32 : i32, i32, i32
  }
  func.func @transform_6(%arg0: i32, %arg1: i32) -> (i32, i32) {
    %c0_i32 = arith.constant 0 : i32
    %c0_i32_0 = arith.constant 0 : i32
    %c0_i32_1 = arith.constant 0 : i32
    return %c0_i32, %c0_i32_0 : i32, i32
  }
  func.func @transform_7(%arg0: i32, %arg1: i32) -> (i32, i32) {
    %c0_i32 = arith.constant 0 : i32
    %c0_i32_0 = arith.constant 0 : i32
    %c0_i32_1 = arith.constant 0 : i32
    return %c0_i32, %c0_i32_0 : i32, i32
  }
  func.func @transform_8(%arg0: i32, %arg1: i32) -> (i32, i32) {
    %c0_i32 = arith.constant 0 : i32
    %c0_i32_0 = arith.constant 0 : i32
    %c0_i32_1 = arith.constant 0 : i32
    return %c0_i32, %c0_i32_0 : i32, i32
  }
  func.func @transform_9(%arg0: i32, %arg1: i32) -> (i32, i32) {
    %c0_i32 = arith.constant 0 : i32
    %c0_i32_0 = arith.constant 0 : i32
    %c0_i32_1 = arith.constant 0 : i32
    return %c0_i32, %c0_i32_0 : i32, i32
  }
  func.func @transform_10(%arg0: i32, %arg1: i32) -> (i32, i32) {
    %c0_i32 = arith.constant 0 : i32
    %c0_i32_0 = arith.constant 0 : i32
    %c0_i32_1 = arith.constant 0 : i32
    return %c0_i32, %c0_i32_0 : i32, i32
  }
  func.func @transform_11(%arg0: i32, %arg1: i32) -> (i32, i32) {
    %c0_i32 = arith.constant 0 : i32
    %c0_i32_0 = arith.constant 0 : i32
    %c0_i32_1 = arith.constant 0 : i32
    return %c0_i32, %c0_i32_0 : i32, i32
  }
  func.func @transform_12(%arg0: i32, %arg1: i32) -> (i32, i32) {
    %c0_i32 = arith.constant 0 : i32
    %c0_i32_0 = arith.constant 0 : i32
    %c0_i32_1 = arith.constant 0 : i32
    return %c0_i32, %c0_i32_0 : i32, i32
  }
  func.func @transform_13(%arg0: i32, %arg1: i32) -> (i32, i32) {
    %c0_i32 = arith.constant 0 : i32
    %c0_i32_0 = arith.constant 0 : i32
    %c0_i32_1 = arith.constant 0 : i32
    return %c0_i32, %c0_i32_0 : i32, i32
  }
  func.func @transform_14(%arg0: i32, %arg1: i32) -> (i32, i32) {
    %c0_i32 = arith.constant 0 : i32
    %c0_i32_0 = arith.constant 0 : i32
    %c0_i32_1 = arith.constant 0 : i32
    return %c0_i32, %c0_i32_0 : i32, i32
  }
  func.func @transform_15(%arg0: i32, %arg1: i32) -> (i32, i32, i32) {
    %c0_i32 = arith.constant 0 : i32
    %c0_i32_0 = arith.constant 0 : i32
    return %arg0, %arg1, %c0_i32 : i32, i32, i32
  }
  func.func @transform_16(%arg0: i32, %arg1: i32) -> (i32, i32, i32, i32) {
    %c0_i32 = arith.constant 0 : i32
    %c0_i32_0 = arith.constant 0 : i32
    %c0_i32_1 = arith.constant 0 : i32
    return %arg0, %arg1, %c0_i32, %c0_i32_0 : i32, i32, i32, i32
  }
  func.func @transform_17(%arg0: i32, %arg1: i32) -> (i32, i32, i32) {
    %c0_i32 = arith.constant 0 : i32
    %c0_i32_0 = arith.constant 0 : i32
    return %arg0, %arg1, %c0_i32 : i32, i32, i32
  }
}

</mosaic_0001>

<bundles_post_ra>
// kernel: tpu_custom_call.1
= control target key start
LH: loop header
LB: loop body
LE: loop exit
PB: predicated region body
PF: predicated region fallthrough
CT: control target
= control target key end

     0   :  { %s4863_s0 = inlined_call_operand.vmem [shape: f32[2,16,32], index: 0, kind: input, shape index: {}]   ;;  %s4864_s1 = inlined_call_operand.vmem [shape: f32[2,16,32], index: 1, kind: input, shape index: {}]   ;;  %s4865_s2 = inlined_call_operand.hbm [shape: f32[2,16,16,32], index: 2, kind: input, shape index: {}]   ;;  %s4866_s3 = inlined_call_operand.vmem [shape: f32[2,16,2], index: 3, kind: input, shape index: {}]   ;;  %s4867_s4 = inlined_call_operand.vmem [shape: f32[2,16,2], index: 4, kind: input, shape index: {}]   ;;  %s4868_s5 = inlined_call_operand.hbm [shape: f32[2,16,16], index: 5, kind: input, shape index: {}]   ;;  %s4869_s6 = inlined_call_operand.vmem [shape: bf16[32,64], index: 6, kind: input, shape index: {}]   ;;  %s4870_s7 = inlined_call_operand.hbm [shape: f32[1,64], index: 7, kind: input, shape index: {}]   ;;  %s4871_s8 = inlined_call_operand.hbm [shape: bf16[32,64], index: 8, kind: input, shape index: {}]   ;;  %s4872_s9 = inlined_call_operand.vmem [shape: f32[1,64], index: 9, kind: input, shape index: {}]   ;;  %s4873_s10 = inlined_call_operand.hbm [shape: bf16[32,32], index: 10, kind: input, shape index: {}]   ;;  %s4874_s11 = inlined_call_operand.vmem [shape: f32[1,32], index: 11, kind: input, shape index: {}]   ;;  %s4875_s12 = inlined_call_operand.vmem [shape: f32[4,32], index: 12, kind: input, shape index: {}]   ;;  %s4876_s13 = inlined_call_operand.hbm [shape: bf16[32,128], index: 13, kind: input, shape index: {}]   ;;  %s4877_s14 = inlined_call_operand.vmem [shape: f32[1,128], index: 14, kind: input, shape index: {}]   ;;  %s4878_s15 = inlined_call_operand.hbm [shape: f32[2,16,32], index: 15, kind: output, shape index: {0}]   ;;  %s4879_s16 = inlined_call_operand.hbm [shape: f32[2,16,16,32], index: 16, kind: output, shape index: {1}]   ;;  %s4880_s17 = inlined_call_operand.vmem [shape: f32[2,16,2], index: 17, kind: output, shape index: {2}]  }
   0x1   :  { %4914 = sst [smem:[#allocation40_spill]] %s4863_s0 }
   0x2   :  { %4915 = sst [smem:[#allocation41_spill]] %s4864_s1 }
   0x3   :  { %4916 = sst [smem:[#allocation42_spill]] %s4865_s2 }
   0x4   :  { %4917 = sst [smem:[#allocation43_spill]] %s4866_s3 }
   0x5   :  { %4918 = sst [smem:[#allocation44_spill]] %s4867_s4 }
   0x6   :  { %4919 = sst [smem:[#allocation45_spill]] %s4869_s6 }
   0x7   :  { %4920 = sst [smem:[#allocation46_spill]] %s4870_s7 }
   0x8   :  { %4921 = sst [smem:[#allocation47_spill]] %s4871_s8 }
   0x9   :  { %4922 = sst [smem:[#allocation48_spill]] %s4872_s9 }
   0xa   :  { %4923 = sst [smem:[#allocation49_spill]] %s4873_s10 }
   0xb   :  { %4924 = sst [smem:[#allocation50_spill]] %s4874_s11 }
   0xc   :  { %4925 = sst [smem:[#allocation51_spill]] %s4875_s12 }
   0xd   :  { %4926 = sst [smem:[#allocation52_spill]] %s4876_s13 }
   0xe   :  { %4927 = sst [smem:[#allocation53_spill]] %s4877_s14 }
   0xf   :  { %4928 = sst [smem:[#allocation54_spill]] %s4878_s15 }
  0x10   :  { %4929 = sst [smem:[#allocation55_spill]] %s4879_s16 }
  0x11   :  { %4930 = sst [smem:[#allocation56_spill]] %s4880_s17 }
  0x12   :  { %23 = vsyncpa [#allocation3], 0 }
  0x13   :  { %25 = vsyncpa [#allocation3 + $0x1], 0 }
  0x14   :  { %26 = vsyncpa [#allocation6], 0 }
  0x15   :  { %28 = vsyncpa [#allocation6 + $0x1], 0 }
  0x16   :  { %29 = vsyncpa [#allocation9], 0 }
  0x17   :  { %30 = vsyncpa [#allocation12], 0 }
  0x18   :  { %31 = vsyncpa [#allocation4], 0 }
  0x19   :  { %33 = vsyncpa [#allocation4 + $0x1], 0 }
  0x1a   :  { %34 = vsyncpa [#allocation15], 0 }
  0x1b   :  { %36 = vsyncpa [#allocation15 + $0x1], 0  ;;  %s3765_s24 = smov 0   ;;  %s3767_s25 = smov 0  }
  0x1c   :  { %s3769_s26 = smov 0   ;;  %s3771_s27 = smov 0  }
  0x1d   :  { %s3773_s28 = smov 0   ;;  %s3775_s29 = smov 0  }
  0x1e   :  { %s3777_s0 = smov 0   ;;  %s3779_s30 = smov 0  }
  0x1f LB: > { %4931 = sst [smem:[#allocation23_spill]] %s3626_s24  ;;  %s3806_s18 = sadd.s32 4294967295, %s3654_s30   ;;  %s3654_s30 = sphi %s3779_s30, %s42_s30   ;;  %s3650_s0 = sphi %s3777_s0, %s5007_s0   ;;  %s3646_s29 = sphi %s3775_s29, %s5006_s29   ;;  %s3642_s28 = sphi %s3773_s28, %s5005_s28   ;;  %s3638_s27 = sphi %s3771_s27, %s5004_s27   ;;  %s3634_s26 = sphi %s3769_s26, %s5003_s26   ;;  %s3630_s25 = sphi %s3767_s25, %s5002_s25   ;;  %s3626_s24 = sphi %s3765_s24, %s5001_s24  }
  0x20   : > { %s2915_s19 = sadd.s32 4294967294, %s3654_s30   ;;  %p130_p0 = scmp.ne.s32.totalorder %s3630_s25, %s3626_s24 }
  0x21   : > { %p4885_p1 = scmp.eq.s32.totalorder %s3806_s18, 0  ;;  %p433_p3 = scmp.eq.s32.totalorder %s2915_s19, 3 }
  0x22   : > { %p2916_p5 = scmp.ge.s32.totalorder %s3654_s30, 1  ;;  %p496_p7 = scmp.lt.s32.totalorder %s3654_s30, 5 }
  0x23   : > { %p3815_p4 = por %p4885_p1, %p130_p0  ;;  %p3820_p6 = por %p433_p3, %p130_p0 }
  0x24   : > { %p3825_p8 = pnand %p2916_p5, %p496_p7  ;;  %s3656_s22 = smov [#allocation7]  }
  0x25   : > { %s4933_s20 = scalar_select %p3820_p6, 1, 0 }
  0x26   : > { %s512_s23 = sshll.u32 %s3656_s22, 4  ;;  %p3124_p9 = pneg %p3825_p8  ;;  %s513_s23 = int_to_ptr.vmem [resolvable:$true] %s512_s23 }
  0x27   : > { %4934 = sst [smem:[#allocation24_spill]] %s4933_s20  ;;  %s3657_s19 = smov [#allocation8]  }
  0x28   : > { %s522_s24 = sshll.u32 %s3657_s19, 4  ;;  %p3833_p10 = pnand %p3124_p9, %p4885_p1  ;;  %s3837_s24 = int_to_ptr.vmem [resolvable:$true] %s522_s24 }
  0x29   : > { %s3658_s20 = smov [#allocation10]   ;;  %s3363_s4 = scalar_lea.vmem %s513_s23, 16 }
  0x2a   : > { %s538_s17 = sshll.u32 %s3658_s20, 4  ;;  %p3354_p11 = pneg %p3833_p10  ;;  %s539_s17 = int_to_ptr.vmem [resolvable:$true] %s538_s17 }
  0x2b   : > { %p3364_p12 = scmp.ne.s32.totalorder %s513_s23, %s3363_s4  ;;  %s3370_s22 = scalar_lea.vmem %s513_s23, 32 }
  0x2c   : > { %p3371_p3 = scmp.lt.s32.totalorder %s513_s23, %s513_s23  ;;  %p3372_p5 = scmp.lt.s32.totalorder %s3370_s22, %s3363_s4 }
  0x2d   : > { %p3366_p13 = pnand %p3364_p12, %p3354_p11 }
  0x2e   : > { %p3373_p7 = por %p3372_p5, %p3371_p3 }
  0x2f   : > { %p3367_p0 = pneg %p3366_p13 }
  0x31   : > { %p3374_p9 = pnand %p3373_p7, %p3367_p0 }
  0x33   : > { %3377 = shalt.err (!%p3374_p9)
}
  0x34   : > { %s4937_s7 = sld [smem:[#allocation46_spill]]  ;;  %s3389_s20 = scalar_lea.vmem %s3837_s24, 256 }
  0x35   : > { %p3390_p1 = scmp.ne.s32.totalorder %s3837_s24, %s3389_s20  ;;  %p3397_p3 = scmp.lt.s32.totalorder %s3837_s24, %s3837_s24 }
  0x36   : > { %p3398_p0 = scmp.lt.s32.totalorder %s3389_s20, %s3389_s20 }
  0x37   : > { %p3392_p12 = pnand %p3390_p1, %p3354_p11 }
  0x38   : > { %p3399_p5 = por %p3398_p0, %p3397_p3 }
  0x39   : > { %p3393_p13 = pneg %p3392_p12 }
  0x3a   : > { %3127 = dma.hbm_to_vmem [thread:$0]  (!%p3833_p10), %s4937_s7, 16, %s513_s23, [#allocation6]  }
  0x3b   : > { %p3400_p7 = pnand %p3399_p5, %p3393_p13 }
  0x3d   : > { %3403 = shalt.err (!%p3400_p7)
}
  0x3e   : > { %s3659_s4 = smov 64   ;;  %s3660_s16 = smov 4  }
  0x3f   : > { %s4938_s8 = sld [smem:[#allocation47_spill]]  ;;  %s3415_s19 = scalar_lea.vmem %s539_s17, 256 }
  0x40   : > { %p3416_p1 = scmp.ne.s32.totalorder %s539_s17, %s3415_s19  ;;  %p3423_p3 = scmp.lt.s32.totalorder %s539_s17, %s539_s17 }
  0x41   : > { %p3424_p13 = scmp.lt.s32.totalorder %s3415_s19, %s3415_s19 }
  0x42   : > { %p3418_p9 = pnand %p3416_p1, %p3354_p11 }
  0x43   : > { %p3425_p0 = por %p3424_p13, %p3423_p3 }
  0x44   : > { %p3419_p12 = pneg %p3418_p9 }
  0x45   : > { %3130 = dma.hbm_to_vmem [thread:$0]  (!%p3833_p10), %s4938_s8, 256, %s3837_s24, [#allocation9], %s3659_s4, %s3659_s4, %s3660_s16  }
  0x46   : > { %p3426_p5 = pnand %p3425_p0, %p3419_p12 }
  0x48   : > { %3429 = shalt.err (!%p3426_p5)
}
  0x49   : > { %s4939_s10 = sld [smem:[#allocation49_spill]]  ;;  %s3661_s24 = smov [#allocation11]  }
  0x4a   : > { %s557_s22 = sshll.u32 %s3661_s24, 4  ;;  %s558_s22 = int_to_ptr.vmem [resolvable:$true] %s557_s22 }
  0x4b   : > { %s3441_s23 = scalar_lea.vmem %s558_s22, 256  ;;  %p3449_p2 = scmp.lt.s32.totalorder %s558_s22, %s558_s22 }
  0x4c   : > { %p3442_p7 = scmp.ne.s32.totalorder %s558_s22, %s3441_s23  ;;  %p3450_p3 = scmp.lt.s32.totalorder %s3441_s23, %s3441_s23 }
  0x4e   : > { %p3444_p1 = pnand %p3442_p7, %p3354_p11  ;;  %p3451_p12 = por %p3450_p3, %p3449_p2 }
  0x4f   : > { %3133 = dma.hbm_to_vmem [thread:$0]  (!%p3833_p10), %s4939_s10, 256, %s539_s17, [#allocation9], %s3659_s4, %s3659_s4, %s3660_s16  }
  0x50   : > { %p3445_p9 = pneg %p3444_p1 }
  0x52   : > { %p3452_p13 = pnand %p3451_p12, %p3445_p9 }
  0x54   : > { %3455 = shalt.err (!%p3452_p13)
}
  0x55   : > { %s4940_s13 = sld [smem:[#allocation52_spill]]  ;;  %s51_s17 = sadd.s32 1, %s3646_s29 }
  0x56   : > { %s54_s20 = sadd.s32 1, %s3650_s0  ;;  %p52_p2 = scmp.ge.s32.totalorder %s51_s17, 2 }
  0x57   : > { %s117_s15 = sadd.s32 1, %s3634_s26  ;;  %p124_p11 = scmp.ne.s32.totalorder %s3634_s26, %s3630_s25 }
  0x58   : > { %p125_p0 = scmp.eq.s32.totalorder %s3654_s30, 0  ;;  %s5009_s17 = smov (%p52_p2, %s51_s17), 0 }
  0x59   : > { %4941 = sst [smem:[#allocation25_spill]] %s5009_s17  ;;  %s5011_s20 = smov (!%p52_p2, %s54_s20), %s3650_s0 }
  0x5a   : > { %s113_s24 = ssub.s32 %s3646_s29, %s5009_s17  ;;  %p3889_p5 = por %p125_p0, %p124_p11 }
  0x5b   : > { %3136 = dma.hbm_to_vmem [thread:$0]  (!%p3833_p10), %s4940_s13, 256, %s558_s22, [#allocation12], %s3659_s4, %s3659_s4, %s3660_s16  }
  0x5c   : > { %p56_p10 = scmp.ge.s32.totalorder %s5011_s20, 2  ;;  %p4943_p7 = scmp.eq.s32.totalorder %s3806_s18, 3 }
  0x5d   : > { %p3155_p9 = scmp.lt.s32.totalorder %s3654_s30, 4  ;;  %s3901_s16 = sand.u32 1, %s3634_s26  }
  0x5e   : > { %p3895_p1 = por %p4943_p7, %p124_p11  ;;  %s5013_s20 = smov (%p56_p10, %s5011_s20), 0 }
  0x5f   : > { %4946 = sst [smem:[#allocation27_spill]] %s5013_s20  ;;  %s2922_s22 = sshll.u32 %s3901_s16, 7 }
  0x60   : > { %s4944_s4 = scalar_select %p3895_p1, 1, 0 }
  0x61   : > { %s112_s19 = ssub.s32 %s3650_s0, %s5013_s20  ;;  %s3006_s8 = sshll.u32 %s3646_s29, 4 }
  0x62   : > { %4945 = sst [smem:[#allocation26_spill]] %s4944_s4  ;;  %s114_s7 = sor.u32 %s113_s24, %s112_s19 }
  0x63   : > { %p115_p3 = scmp.eq.s32.totalorder %s114_s7, 0  ;;  %s2925_s10 = sshll.u32 %s3650_s0, 5 }
  0x64   : > { %s604_s13 = sadd.s32 %s3006_s8, %s2925_s10  ;;  %s597_s17 = scalar_lea.vmem [#allocation2], %s2922_s22 }
  0x65   : > { %s607_s4 = sshll.u32 %s597_s17, 4  ;;  %s2926_s14 = sshll.u32 %s604_s13, 7  ;;  %s608_s4 = int_to_ptr.vmem [resolvable:$true] %s607_s4 }
  0x66   : > { %s3911_s3 = scalar_select %p115_p3, %s3634_s26, %s117_s15  }
  0x67   : > { %s4948_s2 = sld [smem:[#allocation42_spill]]  ;;  %p3920_p12 = pnand %p3155_p9, %p3889_p5 }
  0x68   : > { %4947 = sst [smem:[#allocation28_spill]] %s3911_s3  ;;  %s636_s24 = sand.u32 1, %s3654_s30  }
  0x69   : > { %s594_s8 = scalar_lea.sflag [#allocation3], %s3901_s16  ;;  %p3458_p13 = pneg %p3920_p12 }
  0x6a   : > { %s3469_s10 = scalar_lea.vmem %s608_s4, 2048  ;;  %s3662_s11 = smov [#allocation2]  }
  0x6b   : > { %p3470_p2 = scmp.ne.s32.totalorder %s608_s4, %s3469_s10  ;;  %s3474_s12 = sshll.u32 %s3662_s11, 4  ;;  %s3475_s12 = int_to_ptr.vmem [resolvable:$false] %s3474_s12 }
  0x6c   : > { %s3476_s13 = scalar_lea.vmem %s3475_s12, 4096  ;;  %p3477_p5 = scmp.lt.s32.totalorder %s608_s4, %s3475_s12 }
  0x6d   : > { %s606_s9 = scalar_lea.hbm %s4948_s2, %s2926_s14  ;;  %p3472_p11 = pnand %p3470_p2, %p3458_p13 }
  0x6e   : > { %p3478_p10 = scmp.lt.s32.totalorder %s3476_s13, %s3469_s10 }
  0x6f   : > { %p3473_p0 = pneg %p3472_p11 }
  0x70   : > { %p3479_p7 = por %p3478_p10, %p3477_p5 }
  0x72   : > { %p3480_p9 = pnand %p3479_p7, %p3473_p0 }
  0x74   : > { %3483 = shalt.err (!%p3480_p9)
}
  0x75   : > { %s3663_s14 = smov 128   ;;  %s3664_s17 = smov 8  }
  0x76   : > { %3140 = dma.hbm_to_vmem [thread:$0]  (!%p3920_p12), %s606_s9, 2048, %s608_s4, %s594_s8, %s3663_s14, %s3663_s14, %s3664_s17  }
  0x77   : > { %s2927_s15 = sshll.u32 %s3901_s16, 3  ;;  %s2928_s23 = sshll.u32 %s3650_s0, 1 }
  0x78   : > { %s645_s22 = sadd.s32 %s3646_s29, %s2928_s23  ;;  %s640_s19 = scalar_lea.vmem [#allocation5], %s2927_s15 }
  0x79   : > { %s649_s7 = sshll.u32 %s640_s19, 4  ;;  %s2929_s11 = sshll.u32 %s645_s22, 7  ;;  %s650_s7 = int_to_ptr.vmem [resolvable:$true] %s649_s7 }
  0x7a   : > { %s647_s13 = scalar_lea.hbm %s4868_s5, %s2929_s11  ;;  %s637_s2 = scalar_lea.sflag [#allocation6], %s636_s24 }
  0x7b   : > { %s3497_s20 = scalar_lea.vmem %s650_s7, 128  ;;  %s3665_s3 = smov [#allocation5]  }
  0x7c   : > { %p3498_p3 = scmp.ne.s32.totalorder %s650_s7, %s3497_s20  ;;  %s3502_s9 = sshll.u32 %s3665_s3, 4  ;;  %s3503_s9 = int_to_ptr.vmem [resolvable:$false] %s3502_s9 }
  0x7d   : > { %s3504_s4 = scalar_lea.vmem %s3503_s9, 256  ;;  %p3505_p0 = scmp.lt.s32.totalorder %s650_s7, %s3503_s9 }
  0x7e   : > { %p3500_p2 = pnand %p3498_p3, %p3458_p13  ;;  %p3506_p5 = scmp.lt.s32.totalorder %s3504_s4, %s3497_s20 }
  0x80   : > { %p3501_p11 = pneg %p3500_p2  ;;  %p3507_p10 = por %p3506_p5, %p3505_p0 }
  0x82   : > { %p3508_p7 = pnand %p3507_p10, %p3501_p11 }
  0x84   : > { %3511 = shalt.err (!%p3508_p7)
}
  0x85   : > { %3143 = dma.hbm_to_vmem [thread:$0]  (!%p3920_p12), %s647_s13, 128, %s650_s7, %s637_s2  }
  0x86   : > { %658 = sbr.rel (%p3825_p8) target bundleno = 1298 (0x512), region = 80 }
  0x8b   : > { %s3947_s16 = sand.u32 1, %s3630_s25  }
  0x8c   : > { %s2931_s3 = sshll.u32 %s3947_s16, 7  ;;  %s661_s24 = scalar_lea.sflag [#allocation3], %s3947_s16 }
  0x8d   : > { %s3953_s20 = scalar_lea.vmem [#allocation2], %s2931_s3 }
  0x8e   : > { %3597 = dma.done.wait (%p3815_p4), %s661_s24, 2048  }
  0x8f   : > { %3599 = vsyncadd (%p3815_p4), %s661_s24, 4294965248  ;;  %s669_s2 = sand.u32 1, %s3806_s18   ;;  %s2932_s6 = sshll.u32 %s3947_s16, 3 }
  0x90   : > { %s670_s21 = scalar_lea.sflag [#allocation6], %s669_s2  ;;  %s3963_s8 = scalar_lea.vmem [#allocation5], %s2932_s6 }
  0x91   : > { %3601 = dma.done.wait (%p3815_p4), %s670_s21, 128  }
  0x92   : > { %3603 = vsyncadd (%p3815_p4), %s670_s21, 4294967168  ;;  %p4950_p8 = scmp.eq.s32.totalorder %s3806_s18, 0 }
  0x94   : > { %3605 = dma.done.wait (%p4950_p8), [#allocation6], 16   ;;  %p4951_p12 = pmov %p4950_p8 }
  0x95   : > { %p4952_p13 = pmov %p4950_p8 }
  0x96   : > { %3607 = vsyncadd (%p4951_p12), [#allocation6], 4294967280 }
  0x97   : > { %3609 = dma.done.wait (%p4952_p13), [#allocation9], 512   ;;  %p4953_p9 = pmov %p4950_p8 }
  0x98   : > { %p4954_p3 = pmov %p4950_p8 }
  0x99   : > { %3611 = vsyncadd (%p4953_p9), [#allocation9], 4294966784 }
  0x9a   : > { %3613 = dma.done.wait (%p4954_p3), [#allocation12], 256   ;;  %p4955_p2 = pmov %p4954_p3 }
  0x9b   : > { %p784_p4 = scmp.lt.s32.totalorder %s3642_s28, 1  ;;  %v3666_v0 = vmov 0.0   ;;  %p791_p11 = scmp.lt.s32.totalorder %s3638_s27, 1  ;;  %vm3667_vm0 = vmmov 0   ;;  %v3243_v2 = vld [vmem:[#allocation8 + $0x8] sm:$0xff]   ;;  %v3245_v4 = vld [vmem:[#allocation8] sm:$0xff]   ;;  %v4893_v38 = vlaneseq }
  0x9c   : > { %3615 = vsyncadd (%p4955_p2), [#allocation12], 4294967040  ;;  %3038 = vmatprep.subr.bf16.mxu0 %v3666_v0  ;;  %3046 = vmatprep.subr.bf16.mxu1 %v3666_v0  ;;  %s4956_s7 = sld [smem:[#allocation45_spill]]  ;;  %v3246_v9 = vld [vmem:[#allocation10 + $0x8] sm:$0xff]   ;;  %vm868_vm1 = vcmask 261120   ;;  %v3247_v11 = vld [vmem:[#allocation10] sm:$0xff]  }
  0x9d   : > { %3042 = vmatprep.mubr.msk.bf16.mxu0 %vm3667_vm0, %v3666_v0  ;;  %3050 = vmatprep.mubr.msk.bf16.mxu1 %vm3667_vm0, %v3666_v0  ;;  %s3990_s18 = scalar_select %p784_p4, %s3642_s28, 1  ;;  %v4018_v12 = vld [vmem:[%s3953_s20] sm:$0xff]  ;;  %v4021_v13 = vld [vmem:[%s3953_s20 + $0x8] sm:$0xff]  ;;  %v4028_v15 = vld [vmem:[%s3953_s20 + $0x10] sm:$0xff]  ;;  %v3668_v36 = vmov 1966171168  }
  0x9e   : > { %s792_s1 = scalar_select %p791_p11, %s3638_s27, 1  ;;  %3047 = vmatpush3.bf16.msra.mxu1 %v3243_v2  ;;  %v980_v14 = vpack.c.bf16 %v4021_v13, %v4018_v12  ;;  %v4031_v16 = vld [vmem:[%s3953_s20 + $0x18] sm:$0xff]  ;;  %v4035_v17 = vld [vmem:[%s3953_s20 + $0x20] sm:$0xff]  ;;  %v4038_v18 = vld [vmem:[%s3953_s20 + $0x28] sm:$0xff]  ;;  %v1159_v37 = vunpack.c.l.s4 %v3668_v36  ;;  %v4089_v40 = vshrl.u32 %v4893_v38, 7  ;;  %vm2296_vm2 = vcmask 130112  }
  0x9f   : > { %s2941_s14 = sshll.u32 %s3990_s18, 1  ;;  %s3007_s17 = sshll.u32 %s3990_s18, 4  ;;  %3048 = vmatprep.subr.bf16.mxu1 %v3666_v0  ;;  %v981_v19 = vpack.c.bf16 %v4031_v16, %v4028_v15  ;;  %v982_v20 = vpack.c.bf16 %v4038_v18, %v4035_v17  ;;  %v4048_v21 = vld [vmem:[%s3953_s20 + $0x30] sm:$0xff]  ;;  %v4051_v22 = vld [vmem:[%s3953_s20 + $0x38] sm:$0xff]  ;;  %v4054_v23 = vld [vmem:[%s3953_s20 + $0x40] sm:$0xff]  ;;  %vm1574_vm3 = vcmask 1041409  }
  0xa0   : > { %s794_s15 = sadd.s32 %s2941_s14, %s792_s1  ;;  %s4957_s12 = sld [smem:[#allocation40_spill]]  ;;  %v4057_v24 = vld [vmem:[%s3953_s20 + $0x48] sm:$0xff]  ;;  %v983_v25 = vpack.c.bf16 %v4051_v22, %v4048_v21  ;;  %v4066_v27 = vld [vmem:[%s3953_s20 + $0x50] sm:$0xff]  ;;  %v4069_v28 = vld [vmem:[%s3953_s20 + $0x58] sm:$0xff]  ;;  %v1160_v39 = vunpack.c.0.s8 %v1159_v37  ;;  %4959 = vst [vmem:[#allocation29_spill] sm:$0xff] %v4089_v40  ;;  %v4105_v53 = vsub.s32 0, %v4089_v40 }
  0xa1   : > { %s3995_s23 = sshll.u32 %s794_s15, 3  ;;  %s4958_s24 = sld [smem:[#allocation41_spill]]  ;;  %v984_v26 = vpack.c.bf16 %v4057_v24, %v4054_v23  ;;  %v4072_v29 = vld [vmem:[%s3953_s20 + $0x60] sm:$0xff]  ;;  %v837_v30 = vld [vmem:[%s3953_s20 + $0x68] sm:$0xff]  ;;  %v985_v31 = vpack.c.bf16 %v4069_v28, %v4066_v27  ;;  %v4081_v33 = vld [vmem:[%s3953_s20 + $0x70] sm:$0xff]  ;;  %vm1576_vm4 = vcmask 1042434  }
  0xa2   : > { %v3242_v1 = vld [vmem:[%s4956_s7 + $0x8] sm:$0xff]   ;;  %v3244_v3 = vld [vmem:[%s4956_s7] sm:$0xff]   ;;  %3049 = vmatpush3.bf16.msra.mxu1 %v3245_v4  ;;  %v986_v32 = vpack.c.bf16 %v837_v30, %v4072_v29  ;;  %v839_v34 = vld [vmem:[%s3953_s20 + $0x78] sm:$0xff]  ;;  %s4960_s22 = sld [smem:[#allocation48_spill]]  ;;  %v1163_v44 = vsub.s32 %v1160_v39, %v4089_v40  ;;  %s3669_s19 = smov 96   ;;  %4963 = vst [vmem:[#allocation32_spill] sm:$0xff] %v4105_v53 }
  0xa3   : > { %3039 = vmatpush3.bf16.msra.mxu0 %v3242_v1  ;;  %v987_v35 = vpack.c.bf16 %v839_v34, %v4081_v33  ;;  %v2949_v41 = vld [vmem:[#allocation7] ss:$0 sm:$0xff]  ;;  %s4972_s9 = sld [smem:[#allocation51_spill]]  ;;  %s4375_s4 = scalar_lea.vmem [#allocation14], %s2931_s3  ;;  %vm1578_vm5 = vcmask 1043459   ;;  %vm1580_vm6 = vcmask 1044484  }
  0xa4   : > { %3040 = vmatprep.subr.bf16.mxu0 %v3666_v0  ;;  %s4975_s21 = sld [smem:[#allocation53_spill]]  ;;  %vm1582_vm7 = vcmask 1045509   ;;  %vm1584_vm8 = vcmask 1046534   ;;  %vm1586_vm9 = vcmask 1047559   ;;  %vm2369_vm10 = vcmask 130048   ;;  %s2628_s11 = sshll.u32 %s4375_s4, 4  ;;  %s4768_s11 = int_to_ptr.vmem [resolvable:$true] %s2628_s11 }
  0xa5   : > { %s4976_s14 = sld [smem:[#allocation43_spill]] }
  0xa6   : > { %s788_s13 = scalar_lea.vmem %s4957_s12, %s3007_s17  ;;  %s4965_s12 = sld [smem:[#allocation50_spill]] }
  0xa7   : > { %s4009_s2 = scalar_lea.vmem %s4958_s24, %s3995_s23  ;;  %v821_v5 = vld [vmem:[%s788_s13] sm:$0xff]  ;;  %v822_v6 = vld [vmem:[%s788_s13 + $0x8] sm:$0xff]  ;;  %3041 = vmatpush3.bf16.msra.mxu0 %v3244_v3  ;;  %s4989_s13 = sld [smem:[#allocation55_spill]] }
  0xa8   : > { %v823_v7 = vld [vmem:[%s4009_s2] sm:$0xff]  ;;  %v844_v8 = vpack.c.bf16 %v822_v6, %v821_v5  ;;  %3054 = vmatprep.subr.bf16.mxu0 %v3246_v9  ;;  %s2589_s24 = scalar_lea.sflag [#allocation15], %s3947_s16 }
  0xa9   : > { %v913_v10 = vpack.c.bf16 %v823_v7, %v823_v7  ;;  %v2953_v42 = vld [vmem:[%s4960_s22] ss:$0 sm:$0xff]  ;;  %s3002_s22 = sshll.u32 %s3642_s28, 5 }
  0xaa   : > { %3043 = vmatmul.mubr.msk.bf16.vlgmr.msra.gmra.mxu0 %vm868_vm1, %v844_v8 }
  0xab   : > { %3051 = vmatmul.mubr.msk.bf16.vlgmr.msra.gmra.mxu1 %vm868_vm1, %v913_v10  ;;  %3055 = vmatpush3.bf16.msra.mxu0 %v3246_v9  ;;  %s802_s15 = scalar_lea.vmem %s4976_s14, %s3007_s17  ;;  %s3009_s17 = sshll.u32 %s3638_s27, 4 }
  0xac   : > { %3056 = vmatprep.subr.bf16.mxu0 %v3247_v11  ;;  %3058 = vmatprep.mubr.msk.bf16.mxu0 %vm868_vm1, %v980_v14 }
  0xaf   : > { %3057 = vmatpush3.bf16.msra.mxu0 %v3247_v11 }
  0xb0   : > { %3094 = vmatprep.subr.bf16.mxu0 %v3666_v0 }
  0xb2   : > { %3059 = vmatmul.mubr.msk.bf16.vlgmr.msra.gmra.mxu0 %vm868_vm1, %v981_v19 }
  0xb3   : > { %3062 = vmatprep.mubr.msk.bf16.mxu0 %vm868_vm1, %v982_v20 }
  0xba   : > { %3063 = vmatmul.mubr.msk.bf16.gmra.mxu0 %vm868_vm1, %v983_v25 }
  0xbb   : > { %3066 = vmatprep.mubr.msk.bf16.mxu0 %vm868_vm1, %v984_v26 }
  0xc2   : > { %3067 = vmatmul.mubr.msk.bf16.gmra.mxu0 %vm868_vm1, %v985_v31 }
  0xc3   : > { %3070 = vmatprep.mubr.msk.bf16.mxu0 %vm868_vm1, %v986_v32  ;;  %v4130_v32 = vld [vmem:[%s4965_s12] ss:$0 sm:$0xff] }
  0xca   : > { %3071 = vmatmul.mubr.msk.bf16.gmra.mxu0 %vm868_vm1, %v987_v35 }
  0xcb   : > { %3096 = vmatprep.mubr.msk.bf16.mxu0 %vm3667_vm0, %v3666_v0 }
 0x16a   : > { %v906_v43 = vpop.f32.mrf.mxu0 }
 0x16b   : > { %v4095_v45 = vadd.f32 %v2949_v41, %v906_v43  ;;  %v974_v46 = vpop.f32.mrf.mxu1 }
 0x16c   : > { %v4097_v47 = vadd.f32 %v2953_v42, %v974_v46  ;;  %v3044_v48 = vpop.f32.mrf.mxu0 }
 0x16d   : > { %4961 = vst [vmem:[#allocation30_spill] sm:$0xff] %v4095_v45  ;;  %v3052_v49 = vpop.f32.mrf.mxu1  ;;  %1134 = vrot.lane.b32.xlu0 %v4095_v45, %s3669_s19 }
 0x16e   : > { %4962 = vst [vmem:[#allocation31_spill] sm:$0xff] %v4097_v47  ;;  %v1157_v50 = vcombine.high %v4097_v47, %v4097_v47  ;;  %v1164_v51 = vrot.slane %v4097_v47, %v1163_v44  ;;  %v909_v52 = vpop.f32.mrf.mxu0 }
 0x16f   : > { %v4107_v54 = vadd.f32 %v2949_v41, %v909_v52  ;;  %v977_v55 = vpop.f32.mrf.mxu1 }
 0x170   : > { %v1171_v56 = vrot.slane %v1157_v50, %v1163_v44  ;;  %v1172_v57 = vcombine.high %v1164_v51, %v1164_v51  ;;  %v3045_v58 = vpop.f32.mrf.mxu0  ;;  %v1180_v59 = vrot.slane %v1164_v51, %v1163_v44 }
 0x171   : > { %4964 = vst [vmem:[#allocation33_spill] sm:$0xff] %v4107_v54  ;;  %v3053_v60 = vpop.f32.mrf.mxu1  ;;  %1136 = vrot.lane.b32.xlu0 %v4107_v54, %s3669_s19 }
 0x172   : > { %v1209_v61 = vrot.slane %v1180_v59, %v4105_v53  ;;  %v1202_v62 = vcombine.high %v1180_v59, %v1180_v59  ;;  %v1194_v63 = vrot.slane %v1172_v57, %v1163_v44  ;;  %v1187_v1 = vrot.slane %v1171_v56, %v1163_v44  ;;  %v3060_v19 = vpop.f32.mrf.mxu0 }
 0x173   : > { %v1173_v4 = vcombine.high %v1171_v56, %v1171_v56  ;;  %v1078_v43 = vadd.f32 %v3060_v19, %v4130_v32 }
 0x174   : > { %1238 = vrot.lane.b32.xlu1 %v1209_v61, %s3669_s19  ;;  %v1217_v0 = vrot.slane %v1202_v62, %v4105_v53  ;;  %v1213_v2 = vrot.slane %v1194_v63, %v4105_v53  ;;  %v1204_v3 = vcombine.high %v1194_v63, %v1194_v63  ;;  %v1225_v5 = vrot.slane %v1187_v1, %v4105_v53  ;;  %v1069_v20 = vpop.f32.mrf.mxu0 }
 0x175   : > { %v1203_v6 = vcombine.high %v1187_v1, %v1187_v1  ;;  %v1201_v8 = vrot.slane %v1173_v4, %v1163_v44  ;;  %v1070_v36 = vadd.f32 %v4130_v32, %v1069_v20 }
 0x176   : > { %1242 = vrot.lane.b32.xlu0 %v1217_v0, %s3669_s19  ;;  %v1221_v7 = vrot.slane %v1204_v3, %v4105_v53  ;;  %v3061_v25 = vpop.f32.mrf.mxu0 }
 0x177   : > { %v1233_v9 = vrot.slane %v1203_v6, %v4105_v53  ;;  %v1229_v10 = vrot.slane %v1201_v8, %v4105_v53  ;;  %v1205_v11 = vcombine.high %v1201_v8, %v1201_v8  ;;  %v1081_v56 = vadd.f32 %v3061_v25, %v4130_v32 }
 0x178   : > { %1240 = vrot.lane.b32.xlu1 %v1213_v2, %s3669_s19  ;;  %v1072_v26 = vpop.f32.mrf.mxu0 }
 0x179   : > { %v1237_v14 = vrot.slane %v1205_v11, %v4105_v53  ;;  %v1073_v37 = vadd.f32 %v4130_v32, %v1072_v26 }
 0x17a   : > { %1246 = vrot.lane.b32.xlu0 %v1225_v5, %s3669_s19  ;;  %v3064_v30 = vpop.f32.mrf.mxu0 }
 0x17b   : > { %v1094_v25 = vadd.f32 %v3064_v30, %v4130_v32 }
 0x17c   : > { %1244 = vrot.lane.b32.xlu1 %v1221_v7, %s3669_s19  ;;  %v1085_v31 = vpop.f32.mrf.mxu0 }
 0x17d   : > { %v1086_v51 = vadd.f32 %v4130_v32, %v1085_v31 }
 0x17e   : > { %1250 = vrot.lane.b32.xlu0 %v1233_v9, %s3669_s19  ;;  %v4132_v34 = vpop.f32.mrf.mxu0 }
 0x180   : > { %1248 = vrot.lane.b32.xlu1 %v1229_v10, %s3669_s19  ;;  %v1088_v39 = vpop.f32.mrf.mxu0 }
 0x181   : > { %v1089_v8 = vadd.f32 %v4130_v32, %v1088_v39 }
 0x182   : > { %v3068_v48 = vpop.f32.mrf.mxu0 }
 0x184   : > { %1252 = vrot.lane.b32.xlu1 %v1237_v14, %s3669_s19  ;;  %v1101_v61 = vpop.f32.mrf.mxu0  ;;  %s2625_s19 = sadd.s32 %s3009_s17, %s3002_s22 }
 0x185   : > { %v1102_v63 = vadd.f32 %v4130_v32, %v1101_v61  ;;  %s3003_s10 = sshll.u32 %s2625_s19, 7 }
 0x186   : > { %v3069_v6 = vpop.f32.mrf.mxu0  ;;  %s4773_s3 = scalar_lea.hbm %s4989_s13, %s3003_s10 }
 0x188   : > { %v1104_v20 = vpop.f32.mrf.mxu0 }
 0x189   : > { %v1105_v26 = vadd.f32 %v4130_v32, %v1104_v20 }
 0x1df   : > { %v4134_v35 = vpop.permute.xlu0 %1134 }
 0x1e0   : > { %v1140_v44 = vadd.f32 %v4134_v35, %v1070_v36  ;;  %v1142_v55 = vadd.f32 %v4134_v35, %v1078_v43  ;;  %v1144_v0 = vadd.f32 %v4134_v35, %v1086_v51  ;;  %v1148_v9 = vadd.f32 %v4134_v35, %v1102_v63 }
 0x1e1   : > { %v1146_v30 = vadd.f32 %v4134_v35, %v1094_v25 }
 0x1e3   : > { %v4138_v41 = vpop.permute.xlu0 %1136 }
 0x1e4   : > { %v1141_v42 = vadd.f32 %v4138_v41, %v1073_v37  ;;  %v1143_v1 = vadd.f32 %v4138_v41, %v1081_v56  ;;  %v1145_v31 = vadd.f32 %v4138_v41, %v1089_v8  ;;  %v1097_v56 = vadd.f32 %v4132_v34, %v4130_v32 }
 0x1e6   : > { %v1239_v46 = vpop.permute.xlu1 %1238  ;;  %v1147_v34 = vadd.f32 %v4138_v41, %v1097_v56 }
 0x1e7   : > { %v4143_v49 = vadd.f32 %v1239_v46, %v1140_v44  ;;  %v4145_v50 = vadd.f32 %v1239_v46, %v1141_v42  ;;  %v1149_v44 = vadd.f32 %v4138_v41, %v1105_v26 }
 0x1e8   : > { %v1243_v52 = vpop.permute.xlu0 %1242 }
 0x1e9   : > { %4966 = vst [vmem:[#allocation34_spill] sm:$0xff] %v4143_v49  ;;  %v1622_v58 = vsel %vm868_vm1, %v4145_v50, 0.0  ;;  %v1619_v59 = vsel %vm868_vm1, %v4143_v49, 0.0  ;;  %v1683_v60 = vmul.f32 %v4143_v49, %v4143_v49  ;;  %v4161_v2 = vadd.f32 %v1243_v52, %v1144_v0 }
 0x1ea   : > { %v1241_v57 = vpop.permute.xlu1 %1240  ;;  %1623 = vadd.xlane.f32.xlu1 %v1622_v58  ;;  %1620 = vadd.xlane.f32.xlu0 %v1619_v59  ;;  %v1684_v19 = vmul.f32 %v4145_v50, %v4145_v50  ;;  %v4181_v36 = vadd.f32 %v1243_v52, %v1145_v31  ;;  %v3072_v58 = vpop.f32.mrf.mxu0 }
 0x1eb   : > { %v4156_v62 = vadd.f32 %v1241_v57, %v1142_v55  ;;  %v4163_v3 = vadd.f32 %v1241_v57, %v1143_v1  ;;  %v1699_v4 = vsel %vm868_vm1, %v1683_v60, 0.0  ;;  %v1631_v11 = vsel %vm868_vm1, %v4161_v2, 0.0 }
 0x1ec   : > { %v1247_v7 = vpop.permute.xlu0 %1246  ;;  %v1702_v39 = vsel %vm868_vm1, %v1684_v19, 0.0  ;;  %v1634_v55 = vsel %vm868_vm1, %v4181_v36, 0.0  ;;  %v1110_v57 = vadd.f32 %v3068_v48, %v4130_v32  ;;  %v1687_v61 = vmul.f32 %v4161_v2, %v4161_v2  ;;  %v1117_v1 = vpop.f32.mrf.mxu0 }
 0x1ed   : > { %v1625_v5 = vsel %vm868_vm1, %v4156_v62, 0.0  ;;  %v4170_v10 = vadd.f32 %v1247_v7, %v1148_v9  ;;  %v1628_v14 = vsel %vm868_vm1, %v4163_v3, 0.0  ;;  %v1685_v42 = vmul.f32 %v4156_v62, %v4156_v62 }
 0x1ee   : > { %1700 = vadd.xlane.f32.xlu1 %v1699_v4  ;;  %1626 = vadd.xlane.f32.xlu0 %v1625_v5  ;;  %v1245_v43 = vpop.permute.xlu1 %1244  ;;  %v4190_v46 = vadd.f32 %v1247_v7, %v1149_v44  ;;  %v1686_v63 = vmul.f32 %v4163_v3, %v4163_v3  ;;  %v1150_v48 = vadd.f32 %v4134_v35, %v1110_v57  ;;  %v1711_v7 = vsel %vm868_vm1, %v1687_v61, 0.0 }
 0x1ef   : > { %4967 = vst [vmem:[#allocation35_spill] sm:$0xff] %v4170_v10  ;;  %v1643_v37 = vsel %vm868_vm1, %v4170_v10, 0.0  ;;  %v4192_v51 = vadd.f32 %v1245_v43, %v1146_v30  ;;  %v1705_v52 = vsel %vm868_vm1, %v1685_v42, 0.0  ;;  %v4210_v4 = vadd.f32 %v1245_v43, %v1147_v34 }
 0x1f0   : > { %v1646_v60 = vsel %vm868_vm1, %v4190_v46, 0.0  ;;  %v1708_v8 = vsel %vm868_vm1, %v1686_v63, 0.0  ;;  %v1113_v9 = vadd.f32 %v3069_v6, %v4130_v32  ;;  %v1691_v25 = vmul.f32 %v4170_v10, %v4170_v10  ;;  %v1251_v31 = vpop.permute.xlu0 %1250 }
 0x1f1   : > { %v1637_v59 = vsel %vm868_vm1, %v4192_v51, 0.0  ;;  %v1640_v20 = vsel %vm868_vm1, %v4210_v4, 0.0  ;;  %v1688_v26 = vmul.f32 %v4181_v36, %v4181_v36  ;;  %v1689_v57 = vmul.f32 %v4192_v51, %v4192_v51 }
 0x1f2   : > { %1632 = vadd.xlane.f32.xlu1 %v1631_v11  ;;  %1629 = vadd.xlane.f32.xlu0 %v1628_v14  ;;  %v1249_v0 = vpop.permute.xlu1 %1248  ;;  %v1118_v11 = vadd.f32 %v4130_v32, %v1117_v1  ;;  %v3073_v14 = vpop.f32.mrf.mxu0  ;;  %v1723_v44 = vsel %vm868_vm1, %v1691_v25, 0.0 }
 0x1f3   : > { %v4212_v5 = vadd.f32 %v1249_v0, %v1150_v48  ;;  %v1714_v30 = vsel %vm868_vm1, %v1688_v26, 0.0 }
 0x1f4   : > { %v1152_v6 = vadd.f32 %v4134_v35, %v1118_v11  ;;  %v1690_v11 = vmul.f32 %v4210_v4, %v4210_v4 }
 0x1f5   : > { %v1649_v19 = vsel %vm868_vm1, %v4212_v5, 0.0  ;;  %v1693_v48 = vmul.f32 %v4212_v5, %v4212_v5 }
 0x1f6   : > { %1644 = vadd.xlane.f32.xlu1 %v1643_v37  ;;  %1703 = vadd.xlane.f32.xlu0 %v1702_v39  ;;  %v1151_v37 = vadd.f32 %v4138_v41, %v1113_v9  ;;  %v1120_v39 = vpop.f32.mrf.mxu0  ;;  %v4228_v42 = vadd.f32 %v1251_v31, %v1152_v6  ;;  %v1253_v1 = vpop.permute.xlu1 %1252  ;;  %v1720_v25 = vsel %vm868_vm1, %v1690_v11, 0.0  ;;  %v1431_v11 = vsub.s32 5, %v4089_v40 }
 0x1f8   : > { %v4230_v43 = vadd.f32 %v1249_v0, %v1151_v37  ;;  %v1717_v0 = vsel %vm868_vm1, %v1689_v57, 0.0  ;;  %v3249_v57 = vld [vmem:[#allocation11] sm:$0xff]  }
 0x1fa   : > { %1706 = vadd.xlane.f32.xlu1 %v1705_v52  ;;  %1635 = vadd.xlane.f32.xlu0 %v1634_v55  ;;  %v1121_v52 = vadd.f32 %v4130_v32, %v1120_v39  ;;  %v1655_v55 = vsel %vm868_vm1, %v4228_v42, 0.0  ;;  %v1652_v56 = vsel %vm868_vm1, %v4230_v43, 0.0  ;;  %v1694_v26 = vmul.f32 %v4230_v43, %v4230_v43 }
 0x1fc   : > { %v1153_v61 = vadd.f32 %v4138_v41, %v1121_v52 }
 0x1fe   : > { %1638 = vadd.xlane.f32.xlu1 %v1637_v59  ;;  %1647 = vadd.xlane.f32.xlu0 %v1646_v60  ;;  %v1692_v59 = vmul.f32 %v4190_v46, %v4190_v46  ;;  %v1126_v60 = vadd.f32 %v3072_v58, %v4130_v32  ;;  %v4245_v63 = vadd.f32 %v1251_v31, %v1153_v61  ;;  %v1729_v58 = vsel %vm868_vm1, %v1693_v48, 0.0 }
 0x1ff   : > { %v4895_v61 = vsub.s32 2, %v4089_v40 }
 0x200   : > { %v1726_v34 = vsel %vm868_vm1, %v1692_v59, 0.0  ;;  %v1658_v9 = vsel %vm868_vm1, %v4245_v63, 0.0  ;;  %v840_v59 = vld [vmem:[%s3963_s8] sm:$0xff] }
 0x201   : > { %v4297_v48 = vrot.slane %v840_v59, %v4895_v61 }
 0x202   : > { %1712 = vadd.xlane.f32.xlu1 %v1711_v7  ;;  %1709 = vadd.xlane.f32.xlu0 %v1708_v8  ;;  %v1154_v7 = vadd.f32 %v4134_v35, %v1126_v60  ;;  %v1695_v35 = vmul.f32 %v4228_v42, %v4228_v42  ;;  %v4892_v60 = vsub.s32 1, %v4089_v40 }
 0x204   : > { %v4252_v8 = vadd.f32 %v1253_v1, %v1154_v7  ;;  %v1735_v37 = vsel %vm868_vm1, %v1695_v35, 0.0  ;;  %v1453_v35 = vsub.s32 7, %v4089_v40 }
 0x206   : > { %1650 = vadd.xlane.f32.xlu1 %v1649_v19  ;;  %1641 = vadd.xlane.f32.xlu0 %v1640_v20  ;;  %v1129_v19 = vadd.f32 %v3073_v14, %v4130_v32  ;;  %v1661_v20 = vsel %vm868_vm1, %v4252_v8, 0.0  ;;  %v1732_v32 = vsel %vm868_vm1, %v1694_v26, 0.0  ;;  %v1697_v14 = vmul.f32 %v4252_v8, %v4252_v8 }
 0x207   : > { %v4324_v26 = vrot.slane %v840_v59, %v1453_v35 }
 0x208   : > { %v1155_v31 = vadd.f32 %v4138_v41, %v1129_v19  ;;  %v1741_v39 = vsel %vm868_vm1, %v1697_v14, 0.0  ;;  %v1696_v41 = vmul.f32 %v4245_v63, %v4245_v63  ;;  %v4314_v19 = vrot.slane %v840_v59, %v1431_v11 }
 0x209   : > { %4971 = vst [vmem:[#allocation39_spill] sm:$0xff] %v4324_v26 }
 0x20a   : > { %1724 = vadd.xlane.f32.xlu1 %v1723_v44  ;;  %1715 = vadd.xlane.f32.xlu0 %v1714_v30  ;;  %v4268_v6 = vadd.f32 %v1253_v1, %v1155_v31  ;;  %v1738_v30 = vsel %vm868_vm1, %v1696_v41, 0.0  ;;  %v4894_v1 = vsub.s32 3, %v4089_v40  ;;  %4969 = vst [vmem:[#allocation37_spill] sm:$0xff] %v4314_v19 }
 0x20c   : > { %v1664_v44 = vsel %vm868_vm1, %v4268_v6, 0.0  ;;  %v1698_v52 = vmul.f32 %v4268_v6, %v4268_v6  ;;  %v4304_v7 = vrot.slane %v840_v59, %v4894_v1 }
 0x20e   : > { %1656 = vadd.xlane.f32.xlu1 %v1655_v55  ;;  %1653 = vadd.xlane.f32.xlu0 %v1652_v56  ;;  %v1744_v55 = vsel %vm868_vm1, %v1698_v52, 0.0  ;;  %v3248_v56 = vld [vmem:[#allocation11 + $0x8] sm:$0xff]  }
 0x20f   : > { %3074 = vmatprep.subr.bf16.mxu1 %v3248_v56 }
 0x210   : > { %3075 = vmatpush3.bf16.msra.mxu1 %v3248_v56 }
 0x211   : > { %3076 = vmatprep.subr.bf16.mxu1 %v3249_v57 }
 0x212   : > { %1718 = vadd.xlane.f32.xlu1 %v1717_v0  ;;  %1727 = vadd.xlane.f32.xlu0 %v1726_v34  ;;  %v4287_v0 = vrot.slane %v840_v59, %v4105_v53  ;;  %v4292_v34 = vrot.slane %v840_v59, %v4892_v60 }
 0x214   : > { %3077 = vmatpush3.bf16.msra.mxu1 %v3249_v57 }
 0x216   : > { %1730 = vadd.xlane.f32.xlu1 %v1729_v58  ;;  %1659 = vadd.xlane.f32.xlu0 %v1658_v9  ;;  %v1420_v58 = vsub.s32 4, %v4089_v40 }
 0x218   : > { %v4309_v9 = vrot.slane %v840_v59, %v1420_v58 }
 0x21a   : > { %1662 = vadd.xlane.f32.xlu1 %v1661_v20  ;;  %1721 = vadd.xlane.f32.xlu0 %v1720_v25  ;;  %4968 = vst [vmem:[#allocation36_spill] sm:$0xff] %v4309_v9  ;;  %v1442_v20 = vsub.s32 6, %v4089_v40 }
 0x21c   : > { %v4319_v25 = vrot.slane %v840_v59, %v1442_v20 }
 0x21e   : > { %1736 = vadd.xlane.f32.xlu1 %v1735_v37  ;;  %1733 = vadd.xlane.f32.xlu0 %v1732_v32  ;;  %4970 = vst [vmem:[#allocation38_spill] sm:$0xff] %v4319_v25 }
 0x222   : > { %1742 = vadd.xlane.f32.xlu1 %v1741_v39  ;;  %1665 = vadd.xlane.f32.xlu0 %v1664_v44 }
 0x226   : > { %1739 = vadd.xlane.f32.xlu0 %v1738_v30 }
 0x22a   : > { %1745 = vadd.xlane.f32.xlu0 %v1744_v55 }
 0x233   : > { %2106 = vbcast.lane.b32.xlu1 %v4287_v0, 256 }
 0x237   : > { %2117 = vbcast.lane.b32.xlu1 %v4292_v34, 256 }
 0x23b   : > { %2121 = vbcast.lane.b32.xlu1 %v4292_v34, 264 }
 0x23f   : > { %2132 = vbcast.lane.b32.xlu1 %v4297_v48, 264 }
 0x240   : > { %2110 = vbcast.lane.b32.xlu0 %v4287_v0, 264 }
 0x243   : > { %2143 = vbcast.lane.b32.xlu1 %v4304_v7, 264 }
 0x244   : > { %2128 = vbcast.lane.b32.xlu0 %v4297_v48, 256 }
 0x247   : > { %2154 = vbcast.lane.b32.xlu1 %v4309_v9, 264 }
 0x248   : > { %2139 = vbcast.lane.b32.xlu0 %v4304_v7, 256 }
 0x24b   : > { %2165 = vbcast.lane.b32.xlu1 %v4314_v19, 264 }
 0x24c   : > { %2150 = vbcast.lane.b32.xlu0 %v4309_v9, 256 }
 0x24f   : > { %2176 = vbcast.lane.b32.xlu1 %v4319_v25, 264 }
 0x250   : > { %2161 = vbcast.lane.b32.xlu0 %v4314_v19, 256 }
 0x253   : > { %2187 = vbcast.lane.b32.xlu1 %v4324_v26, 264 }
 0x254   : > { %2172 = vbcast.lane.b32.xlu0 %v4319_v25, 256 }
 0x258   : > { %2183 = vbcast.lane.b32.xlu0 %v4324_v26, 256 }
 0x273   : > { %v1624_v31 = vpop.xlane.xlu1 %1623  ;;  %v1621_v37 = vpop.xlane.xlu0 %1620 }
 0x274   : > { %v1667_v32 = vmul.f32 0.03125, %v1621_v37  ;;  %v1668_v56 = vmul.f32 0.03125, %v1624_v31 }
 0x276   : > { %v1763_v44 = vmul.f32 %v1667_v32, %v1667_v32  ;;  %v1764_v11 = vmul.f32 %v1668_v56, %v1668_v56 }
 0x277   : > { %v1701_v14 = vpop.xlane.xlu1 %1700  ;;  %v1627_v39 = vpop.xlane.xlu0 %1626 }
 0x278   : > { %v1747_v41 = vmul.f32 0.03125, %v1701_v14  ;;  %v4330_v20 = vmul.f32 0.03125, %v1627_v39  ;;  %v1590_v39 = vld [vmem:[%s4972_s9] sm:$0xf] }
 0x27a   : > { %v1779_v30 = vsub.f32 %v1747_v41, %v1763_v44  ;;  %v1765_v1 = vmul.f32 %v4330_v20, %v4330_v20 }
 0x27b   : > { %v1633_v52 = vpop.xlane.xlu1 %1632  ;;  %v1630_v55 = vpop.xlane.xlu0 %1629 }
 0x27c   : > { %v1811_v57 = vadd.f32 1e-05, %v1779_v30  ;;  %v4334_v41 = vmul.f32 0.03125, %v1633_v52 }
 0x27e   : > { %3250 = vrsqrt.f32 %v1811_v57  ;;  %v4339_v57 = vmul.f32 0.03125, %v1630_v55 }
 0x27f   : > { %v1645_v59 = vpop.xlane.xlu1 %1644  ;;  %v1704_v58 = vpop.xlane.xlu0 %1703 }
 0x280   : > { %v1748_v35 = vmul.f32 0.03125, %v1704_v58  ;;  %v4355_v45 = vmul.f32 0.03125, %v1645_v59 }
 0x282   : > { %v1780_v60 = vsub.f32 %v1748_v35, %v1764_v11  ;;  %v1795_v11 = vsub.f32 %v4143_v49, %v1667_v32  ;;  %v4973_v35 = vsub.s32 2, %v4089_v40 }
 0x283   : > { %v1707_v37 = vpop.xlane.xlu1 %1706  ;;  %v1636_v38 = vpop.xlane.xlu0 %1635 }
 0x284   : > { %v1812_v61 = vadd.f32 1e-05, %v1780_v60  ;;  %v1749_v14 = vmul.f32 0.03125, %v1707_v37  ;;  %v4344_v60 = vrot.slane %v1590_v39, %v4973_v35  ;;  %v4357_v25 = vmul.f32 0.03125, %v1636_v38 }
 0x286   : > { %3252 = vrsqrt.f32 %v1812_v61  ;;  %v1781_v44 = vsub.f32 %v1749_v14, %v1765_v1  ;;  %v1767_v1 = vmul.f32 %v4334_v41, %v4334_v41  ;;  %v1766_v14 = vmul.f32 %v4339_v57, %v4339_v57 }
 0x287   : > { %v1639_v31 = vpop.xlane.xlu1 %1638  ;;  %v1648_v30 = vpop.xlane.xlu0 %1647  ;;  %v1768_v38 = vmul.f32 %v4357_v25, %v4357_v25 }
 0x288   : > { %v1813_v58 = vadd.f32 1e-05, %v1781_v44  ;;  %v4974_v44 = vsub.s32 3, %v4089_v40 }
 0x28a   : > { %3254 = vrsqrt.f32 %v1813_v58  ;;  %v4352_v32 = vrot.slane %v1590_v39, %v4974_v44 }
 0x28b   : > { %v3251_v61 = vpop.eup %3250  ;;  %v1713_v52 = vpop.xlane.xlu1 %1712 }
 0x28c   : > { %v1710_v37 = vpop.xlane.xlu0 %1709  ;;  %v1751_v53 = vmul.f32 0.03125, %v1713_v52  ;;  %v1843_v47 = vmul.f32 %v3251_v61, %v1795_v11  ;;  %v1796_v11 = vsub.f32 %v4145_v50, %v1668_v56 }
 0x28d   : > { %v1750_v55 = vmul.f32 0.03125, %v1710_v37 }
 0x28e   : > { %v1783_v58 = vsub.f32 %v1751_v53, %v1767_v1  ;;  %v1863_v35 = vmul.f32 %v4344_v60, %v1843_v47  ;;  %v1771_v53 = vmul.f32 %v4355_v45, %v4355_v45 }
 0x28f   : > { %v1782_v54 = vsub.f32 %v1750_v55, %v1766_v14  ;;  %v1651_v49 = vpop.xlane.xlu1 %1650 }
 0x290   : > { %v1642_v26 = vpop.xlane.xlu0 %1641  ;;  %v1815_v19 = vadd.f32 1e-05, %v1783_v58  ;;  %v1883_v52 = vadd.f32 %v4352_v32, %v1863_v35  ;;  %v4369_v58 = vmul.f32 0.03125, %v1639_v31  ;;  %v4371_v35 = vmul.f32 0.03125, %v1648_v30 }
 0x291   : > { %v1814_v9 = vadd.f32 1e-05, %v1782_v54 }
 0x292   : > { %3256 = vrsqrt.f32 %v1815_v19  ;;  %v1899_v59 = vmax.f32 %v1883_v52, 0.0  ;;  %v1797_v19 = vsub.f32 %v4156_v62, %v4330_v20  ;;  %v1769_v31 = vmul.f32 %v4369_v58, %v4369_v58 }
 0x293   : > { %v3253_v61 = vpop.eup %3252  ;;  %3258 = vrsqrt.f32 %v1814_v9  ;;  %v1725_v39 = vpop.xlane.xlu1 %1724  ;;  %v1772_v30 = vmul.f32 %v4371_v35, %v4371_v35 }
 0x294   : > { %v1716_v47 = vpop.xlane.xlu0 %1715  ;;  %v1755_v1 = vmul.f32 0.03125, %v1725_v39  ;;  %v1844_v54 = vmul.f32 %v3253_v61, %v1796_v11  ;;  %v1915_v14 = vadd.f32 %v1899_v59, %v4018_v12 }
 0x295   : > { %v1752_v37 = vmul.f32 0.03125, %v1716_v47 }
 0x296   : > { %v1787_v56 = vsub.f32 %v1755_v1, %v1771_v53  ;;  %v1864_v44 = vmul.f32 %v4344_v60, %v1844_v54  ;;  %1932 = vst.msk [vmem:[%s4375_s4] sm:$0xff] %vm868_vm1, %v1915_v14 }
 0x297   : > { %v1784_v55 = vsub.f32 %v1752_v37, %v1768_v38  ;;  %v3255_v9 = vpop.eup %3254  ;;  %v1657_v52 = vpop.xlane.xlu1 %1656  ;;  %v4385_v38 = vmul.f32 0.03125, %v1651_v49 }
 0x298   : > { %v1654_v40 = vpop.xlane.xlu0 %1653  ;;  %v1845_v12 = vmul.f32 %v3255_v9, %v1797_v19  ;;  %v1819_v11 = vadd.f32 1e-05, %v1787_v56  ;;  %v1884_v61 = vadd.f32 %v4352_v32, %v1864_v44 }
 0x299   : > { %v1816_v20 = vadd.f32 1e-05, %v1784_v55 }
 0x29a   : > { %3260 = vrsqrt.f32 %v1819_v11  ;;  %v1865_v53 = vmul.f32 %v4344_v60, %v1845_v12  ;;  %v1900_v59 = vmax.f32 %v1884_v61, 0.0  ;;  %v1799_v12 = vsub.f32 %v4161_v2, %v4334_v41 }
 0x29b   : > { %3262 = vrsqrt.f32 %v1816_v20  ;;  %v1719_v39 = vpop.xlane.xlu1 %1718  ;;  %v1798_v11 = vsub.f32 %v4163_v3, %v4339_v57  ;;  %v4393_v20 = vmul.f32 0.03125, %v1642_v26  ;;  %v4401_v57 = vmul.f32 0.03125, %v1657_v52 }
 0x29c   : > { %v1728_v47 = vpop.xlane.xlu0 %1727  ;;  %v1753_v1 = vmul.f32 0.03125, %v1719_v39  ;;  %v1885_v54 = vadd.f32 %v4352_v32, %v1865_v53  ;;  %v1916_v19 = vadd.f32 %v1900_v59, %v4021_v13  ;;  %v1773_v13 = vmul.f32 %v4385_v38, %v4385_v38 }
 0x29d   : > { %v1756_v37 = vmul.f32 0.03125, %v1728_v47  ;;  %v1803_v52 = vsub.f32 %v4170_v10, %v4355_v45 }
 0x29e   : > { %v1785_v56 = vsub.f32 %v1753_v1, %v1769_v31  ;;  %v1901_v44 = vmax.f32 %v1885_v54, 0.0  ;;  %1933 = vst.msk [vmem:[%s4375_s4 + $0x8] sm:$0xff] %vm868_vm1, %v1916_v19  ;;  %v1948_v39 = vpack.c.bf16 %v1916_v19, %v1915_v14 }
 0x29f   : > { %v1788_v55 = vsub.f32 %v1756_v37, %v1772_v30  ;;  %v3257_v9 = vpop.eup %3256  ;;  %v1731_v49 = vpop.xlane.xlu1 %1730  ;;  %v4403_v37 = vmul.f32 0.03125, %v1654_v40 }
 0x2a0   : > { %v1660_v61 = vpop.xlane.xlu0 %1659  ;;  %v3259_v53 = vpop.eup %3258  ;;  %v1817_v31 = vadd.f32 1e-05, %v1785_v56  ;;  %v1757_v47 = vmul.f32 0.03125, %v1731_v49  ;;  %3078 = vmatprep.mubr.msk.bf16.mxu1 %vm868_vm1, %v1948_v39  ;;  %v1917_v41 = vadd.f32 %v1901_v44, %v4028_v15  ;;  %v1847_v26 = vmul.f32 %v3257_v9, %v1799_v12 }
 0x2a1   : > { %v1820_v30 = vadd.f32 1e-05, %v1788_v55  ;;  %v1846_v59 = vmul.f32 %v3259_v53, %v1798_v11  ;;  %v1770_v55 = vmul.f32 %v4393_v20, %v4393_v20  ;;  %v1800_v12 = vsub.f32 %v4181_v36, %v4357_v25 }
 0x2a2   : > { %3264 = vrsqrt.f32 %v1817_v31  ;;  %v1789_v1 = vsub.f32 %v1757_v47, %v1773_v13  ;;  %1934 = vst.msk [vmem:[%s4375_s4 + $0x10] sm:$0xff] %vm868_vm1, %v1917_v41  ;;  %v1867_v56 = vmul.f32 %v4344_v60, %v1847_v26  ;;  %v1775_v11 = vmul.f32 %v4401_v57, %v4401_v57 }
 0x2a3   : > { %3266 = vrsqrt.f32 %v1820_v30  ;;  %v1663_v14 = vpop.xlane.xlu1 %1662  ;;  %v1866_v19 = vmul.f32 %v4344_v60, %v1846_v59  ;;  %v1774_v53 = vmul.f32 %v4403_v37, %v4403_v37  ;;  %v4426_v10 = vmul.f32 0.03125, %v1660_v61 }
 0x2a4   : > { %v1722_v54 = vpop.xlane.xlu0 %1721  ;;  %v1821_v15 = vadd.f32 1e-05, %v1789_v1  ;;  %v1887_v9 = vadd.f32 %v4352_v32, %v1867_v56  ;;  %v4421_v13 = vmul.f32 0.03125, %v1663_v14 }
 0x2a5   : > { %v1754_v44 = vmul.f32 0.03125, %v1722_v54  ;;  %v1886_v40 = vadd.f32 %v4352_v32, %v1866_v19 }
 0x2a6   : > { %3268 = vrsqrt.f32 %v1821_v15  ;;  %v1903_v47 = vmax.f32 %v1887_v9, 0.0 }
 0x2a7   : > { %v1786_v49 = vsub.f32 %v1754_v44, %v1770_v55  ;;  %v3261_v39 = vpop.eup %3260  ;;  %v1737_v31 = vpop.xlane.xlu1 %1736  ;;  %v1902_v30 = vmax.f32 %v1886_v40, 0.0 }
 0x2a8   : > { %v1734_v45 = vpop.xlane.xlu0 %1733  ;;  %v3263_v59 = vpop.eup %3262  ;;  %v1759_v1 = vmul.f32 0.03125, %v1737_v31  ;;  %v1851_v54 = vmul.f32 %v3261_v39, %v1803_v52  ;;  %v1919_v55 = vadd.f32 %v1903_v47, %v4035_v17  ;;  %v1801_v39 = vsub.f32 %v4192_v51, %v4369_v58 }
 0x2a9   : > { %v1818_v26 = vadd.f32 1e-05, %v1786_v49  ;;  %v1758_v25 = vmul.f32 0.03125, %v1734_v45  ;;  %v1918_v19 = vadd.f32 %v1902_v30, %v4031_v16  ;;  %v1848_v56 = vmul.f32 %v3263_v59, %v1800_v12 }
 0x2aa   : > { %v1791_v15 = vsub.f32 %v1759_v1, %v1775_v11  ;;  %v1871_v44 = vmul.f32 %v4344_v60, %v1851_v54  ;;  %1936 = vst.msk [vmem:[%s4375_s4 + $0x20] sm:$0xff] %vm868_vm1, %v1919_v55  ;;  %v1777_v16 = vmul.f32 %v4421_v13, %v4421_v13 }
 0x2ab   : > { %3270 = vrsqrt.f32 %v1818_v26  ;;  %v1790_v14 = vsub.f32 %v1758_v25, %v1774_v53  ;;  %v1743_v40 = vpop.xlane.xlu1 %1742  ;;  %1935 = vst.msk [vmem:[%s4375_s4 + $0x18] sm:$0xff] %vm868_vm1, %v1918_v19  ;;  %v1949_v49 = vpack.c.bf16 %v1918_v19, %v1917_v41  ;;  %v1868_v31 = vmul.f32 %v4344_v60, %v1848_v56 }
 0x2ac   : > { %v1666_v9 = vpop.xlane.xlu0 %1665  ;;  %v1823_v17 = vadd.f32 1e-05, %v1791_v15  ;;  %v1761_v12 = vmul.f32 0.03125, %v1743_v40  ;;  %v1891_v11 = vadd.f32 %v4352_v32, %v1871_v44  ;;  %v1804_v41 = vsub.f32 %v4190_v46, %v4371_v35 }
 0x2ad   : > { %v1822_v52 = vadd.f32 1e-05, %v1790_v14  ;;  %3079 = vmatmul.mubr.msk.bf16.vlgmr.msra.gmra.mxu1 %vm868_vm1, %v1949_v49  ;;  %v1888_v61 = vadd.f32 %v4352_v32, %v1868_v31  ;;  %v4442_v30 = vmul.f32 0.03125, %v1666_v9  ;;  %v1776_v25 = vmul.f32 %v4426_v10, %v4426_v10 }
 0x2ae   : > { %3272 = vrsqrt.f32 %v1823_v17  ;;  %v1793_v53 = vsub.f32 %v1761_v12, %v1777_v16  ;;  %v1907_v26 = vmax.f32 %v1891_v11, 0.0  ;;  %v1805_v14 = vsub.f32 %v4212_v5, %v4385_v38 }
 0x2af   : > { %v3265_v45 = vpop.eup %3264  ;;  %3274 = vrsqrt.f32 %v1822_v52  ;;  %v1904_v59 = vmax.f32 %v1888_v61, 0.0  ;;  %v1778_v49 = vmul.f32 %v4442_v30, %v4442_v30  ;;  %v1802_v12 = vsub.f32 %v4210_v4, %v4393_v20 }
 0x2b0   : > { %v1740_v47 = vpop.xlane.xlu0 %1739  ;;  %v3267_v1 = vpop.eup %3266  ;;  %v1825_v54 = vadd.f32 1e-05, %v1793_v53  ;;  %v1849_v19 = vmul.f32 %v3265_v45, %v1801_v39  ;;  %v4448_v15 = vadd.f32 %v1907_v26, %v4054_v23 }
 0x2b1   : > { %v1760_v58 = vmul.f32 0.03125, %v1740_v47  ;;  %v1920_v35 = vadd.f32 %v1904_v59, %v4038_v18  ;;  %v1852_v56 = vmul.f32 %v3267_v1, %v1804_v41  ;;  %v1807_v1 = vsub.f32 %v4228_v42, %v4401_v57 }
 0x2b2   : > { %3276 = vrsqrt.f32 %v1825_v54  ;;  %v1869_v40 = vmul.f32 %v4344_v60, %v1849_v19  ;;  %1940 = vst.msk [vmem:[%s4375_s4 + $0x40] sm:$0xff] %vm868_vm1, %v4448_v15  ;;  %v1806_v19 = vsub.f32 %v4230_v43, %v4403_v37 }
 0x2b3   : > { %v1792_v44 = vsub.f32 %v1760_v58, %v1776_v25  ;;  %v3269_v9 = vpop.eup %3268  ;;  %1937 = vst.msk [vmem:[%s4375_s4 + $0x28] sm:$0xff] %vm868_vm1, %v1920_v35  ;;  %v1950_v16 = vpack.c.bf16 %v1920_v35, %v1919_v55  ;;  %v1872_v18 = vmul.f32 %v4344_v60, %v1852_v56 }
 0x2b4   : > { %v1746_v31 = vpop.xlane.xlu0 %1745  ;;  %v1889_v38 = vadd.f32 %v4352_v32, %v1869_v40  ;;  %v1853_v52 = vmul.f32 %v3269_v9, %v1805_v14  ;;  %v1809_v14 = vsub.f32 %v4252_v8, %v4421_v13 }
 0x2b5   : > { %v1824_v23 = vadd.f32 1e-05, %v1792_v44  ;;  %v1762_v17 = vmul.f32 0.03125, %v1746_v31  ;;  %3082 = vmatprep.mubr.msk.bf16.mxu1 %vm868_vm1, %v1950_v16  ;;  %v1892_v61 = vadd.f32 %v4352_v32, %v1872_v18  ;;  %v1808_v18 = vsub.f32 %v4245_v63, %v4426_v10 }
 0x2b6   : > { %v1905_v11 = vmax.f32 %v1889_v38, 0.0  ;;  %v1873_v39 = vmul.f32 %v4344_v60, %v1853_v52 }
 0x2b7   : > { %3278 = vrsqrt.f32 %v1824_v23  ;;  %v1794_v55 = vsub.f32 %v1762_v17, %v1778_v49  ;;  %v1908_v53 = vmax.f32 %v1892_v61, 0.0 }
 0x2b8   : > { %v3271_v41 = vpop.eup %3270  ;;  %v1921_v59 = vadd.f32 %v1905_v11, %v4048_v21  ;;  %v1893_v26 = vadd.f32 %v4352_v32, %v1873_v39  ;;  %v1810_v11 = vsub.f32 %v4268_v6, %v4442_v30 }
 0x2b9   : > { %v1826_v45 = vadd.f32 1e-05, %v1794_v55  ;;  %v1850_v47 = vmul.f32 %v3271_v41, %v1802_v12  ;;  %v1924_v20 = vadd.f32 %v1908_v53, %v4057_v24 }
 0x2ba   : > { %1938 = vst.msk [vmem:[%s4375_s4 + $0x30] sm:$0xff] %vm868_vm1, %v1921_v59  ;;  %v1909_v54 = vmax.f32 %v1893_v26, 0.0 }
 0x2bb   : > { %3280 = vrsqrt.f32 %v1826_v45  ;;  %v1870_v25 = vmul.f32 %v4344_v60, %v1850_v47  ;;  %v3273_v58 = vpop.eup %3272  ;;  %1941 = vst.msk [vmem:[%s4375_s4 + $0x48] sm:$0xff] %vm868_vm1, %v1924_v20  ;;  %v1952_v52 = vpack.c.bf16 %v1924_v20, %v4448_v15 }
 0x2bc   : > { %v3275_v21 = vpop.eup %3274  ;;  %v1925_v35 = vadd.f32 %v1909_v54, %v4066_v27  ;;  %v1855_v56 = vmul.f32 %v3273_v58, %v1807_v1  ;;  %v3349_v54 = vld [vmem:[%s3953_s20 + $0x78] sm:$0xff] }
 0x2bd   : > { %v1890_v24 = vadd.f32 %v4352_v32, %v1870_v25  ;;  %v1854_v57 = vmul.f32 %v3275_v21, %v1806_v19  ;;  %v2107_v19 = vpop.permute.xlu1 %2106 }
 0x2be   : > { %1942 = vst.msk [vmem:[%s4375_s4 + $0x50] sm:$0xff] %vm868_vm1, %v1925_v35  ;;  %v1875_v40 = vmul.f32 %v4344_v60, %v1855_v56 }
 0x2bf   : > { %v1906_v44 = vmax.f32 %v1890_v24, 0.0  ;;  %v3277_v9 = vpop.eup %3276  ;;  %v1874_v37 = vmul.f32 %v4344_v60, %v1854_v57 }
 0x2c0   : > { %v1895_v31 = vadd.f32 %v4352_v32, %v1875_v40  ;;  %v1857_v16 = vmul.f32 %v3277_v9, %v1809_v14 }
 0x2c1   : > { %v1922_v49 = vadd.f32 %v1906_v44, %v4051_v22  ;;  %v1894_v27 = vadd.f32 %v4352_v32, %v1874_v37  ;;  %v2118_v21 = vpop.permute.xlu1 %2117  ;;  %v2111_v37 = vpop.permute.xlu0 %2110 }
 0x2c2   : > { %v1911_v23 = vmax.f32 %v1895_v31, 0.0  ;;  %v1877_v17 = vmul.f32 %v4344_v60, %v1857_v16 }
 0x2c3   : > { %1939 = vst.msk [vmem:[%s4375_s4 + $0x38] sm:$0xff] %vm868_vm1, %v1922_v49  ;;  %v1951_v13 = vpack.c.bf16 %v1922_v49, %v1921_v59  ;;  %v1910_v22 = vmax.f32 %v1894_v27, 0.0  ;;  %v3348_v59 = vld [vmem:[%s3953_s20 + $0x68] sm:$0xff]  ;;  %s3671_s20 = smov [#allocation14]  }
 0x2c4   : > { %v3279_v38 = vpop.eup %3278  ;;  %v1927_v61 = vadd.f32 %v1911_v23, %v4072_v29  ;;  %v1897_v10 = vadd.f32 %v4352_v32, %v1877_v17  ;;  %s3516_s1 = sshll.u32 %s3671_s20, 4  ;;  %s3517_s1 = int_to_ptr.vmem [resolvable:$false] %s3516_s1 }
 0x2c5   : > { %3083 = vmatmul.mubr.msk.bf16.gmra.mxu1 %vm868_vm1, %v1951_v13  ;;  %v1856_v12 = vmul.f32 %v3279_v38, %v1808_v18  ;;  %v1926_v55 = vadd.f32 %v1910_v22, %v4069_v28  ;;  %v2122_v14 = vpop.permute.xlu1 %2121  ;;  %p3519_p7 = scmp.lt.s32.totalorder %s4768_s11, %s3517_s1 }
 0x2c6   : > { %3086 = vmatprep.mubr.msk.bf16.mxu1 %vm868_vm1, %v1952_v52  ;;  %1944 = vst.msk [vmem:[%s4375_s4 + $0x60] sm:$0xff] %vm868_vm1, %v1927_v61  ;;  %v1913_v15 = vmax.f32 %v1897_v10, 0.0 }
 0x2c7   : > { %v1876_v39 = vmul.f32 %v4344_v60, %v1856_v12  ;;  %1943 = vst.msk [vmem:[%s4375_s4 + $0x58] sm:$0xff] %vm868_vm1, %v1926_v55  ;;  %v1953_v28 = vpack.c.bf16 %v1926_v55, %v1925_v35 }
 0x2c8   : > { %v3281_v41 = vpop.eup %3280  ;;  %v1929_v45 = vadd.f32 %v1913_v15, %v4081_v33 }
 0x2c9   : > { %v1896_v29 = vadd.f32 %v4352_v32, %v1876_v39  ;;  %v1858_v53 = vmul.f32 %v3281_v41, %v1810_v11  ;;  %v2133_v12 = vpop.permute.xlu1 %2132 }
 0x2ca   : > { %1946 = vst.msk [vmem:[%s4375_s4 + $0x70] sm:$0xff] %vm868_vm1, %v1929_v45 }
 0x2cb   : > { %v1912_v47 = vmax.f32 %v1896_v29, 0.0  ;;  %v1878_v30 = vmul.f32 %v4344_v60, %v1858_v53  ;;  %v3670_v60 = vmov 0  }
 0x2cc   : > { %3241 = vset.pattern.permute.xlu0 %v3670_v60  ;;  %3240 = vset.pattern.permute.xlu1 %v3670_v60 }
 0x2cd   : > { %3087 = vmatmul.mubr.msk.bf16.gmra.mxu1 %vm868_vm1, %v1953_v28  ;;  %v1928_v26 = vadd.f32 %v3348_v59, %v1912_v47  ;;  %v1898_v20 = vadd.f32 %v4352_v32, %v1878_v30  ;;  %v4526_v32 = vld [vmem:[%s4975_s21] ss:$0 sm:$0xff]  ;;  %v2144_v10 = vpop.permute.xlu1 %2143  ;;  %s3512_s21 = scalar_lea.vmem %s4768_s11, 2048 }
 0x2ce   : > { %p3513_p0 = scmp.ne.s32.totalorder %s4768_s11, %s3512_s21 }
 0x2cf   : > { %1945 = vst.msk [vmem:[%s4375_s4 + $0x68] sm:$0xff] %vm868_vm1, %v1928_v26  ;;  %v1954_v1 = vpack.c.bf16 %v1928_v26, %v1927_v61  ;;  %v1914_v25 = vmax.f32 %v1898_v20, 0.0  ;;  %v2129_v61 = vpop.permute.xlu0 %2128 }
 0x2d0   : > { %p3514_p5 = pnand %p3513_p0, %p3895_p1 }
 0x2d1   : > { %3090 = vmatprep.mubr.msk.bf16.mxu1 %vm868_vm1, %v1954_v1  ;;  %v1930_v33 = vadd.f32 %v3349_v54, %v1914_v25  ;;  %v2155_v29 = vpop.permute.xlu1 %2154 }
 0x2d2   : > { %p3515_p10 = pneg %p3514_p5 }
 0x2d3   : > { %1947 = vst.msk [vmem:[%s4375_s4 + $0x78] sm:$0xff] %vm868_vm1, %v1930_v33  ;;  %v1955_v58 = vpack.c.bf16 %v1930_v33, %v1929_v45  ;;  %v2140_v11 = vpop.permute.xlu0 %2139  ;;  %s3518_s4 = scalar_lea.vmem %s3517_s1, 4096 }
 0x2d4   : > { %p3520_p8 = scmp.lt.s32.totalorder %s3518_s4, %s3512_s21 }
 0x2d5   : > { %3091 = vmatmul.mubr.msk.bf16.gmra.mxu1 %vm868_vm1, %v1955_v58  ;;  %v2166_v58 = vpop.permute.xlu1 %2165 }
 0x2d6   : > { %p3521_p12 = por %p3520_p8, %p3519_p7 }
 0x2d7   : > { %v2151_v47 = vpop.permute.xlu0 %2150 }
 0x2d8   : > { %p3522_p13 = pnand %p3521_p12, %p3515_p10 }
 0x36d   : > { %v3080_v24 = vpop.f32.mrf.mxu1 }
 0x36e   : > { %v2046_v56 = vadd.f32 %v3080_v24, %v4526_v32  ;;  %v2162_v24 = vpop.permute.xlu0 %2161 }
 0x36f   : > { %v2037_v35 = vpop.f32.mrf.mxu1 }
 0x370   : > { %v2038_v44 = vadd.f32 %v4526_v32, %v2037_v35  ;;  %v4531_v49 = vmul.f32 %v2118_v21, %v2046_v56 }
 0x371   : > { %v3081_v57 = vpop.f32.mrf.mxu1 }
 0x372   : > { %v2049_v40 = vadd.f32 %v3081_v57, %v4526_v32  ;;  %v4536_v27 = vmul.f32 %v2107_v19, %v2038_v44 }
 0x373   : > { %v2040_v9 = vpop.f32.mrf.mxu1 }
 0x374   : > { %v4533_v31 = vmul.f32 %v2122_v14, %v2049_v40  ;;  %v2041_v16 = vadd.f32 %v4526_v32, %v2040_v9 }
 0x376   : > { %v2374_v18 = vpack.c.bf16 %v4533_v31, %v4531_v49  ;;  %v4540_v13 = vmul.f32 %v2111_v37, %v2041_v16 }
 0x378   : > { %v2373_v23 = vpack.c.bf16 %v4540_v13, %v4536_v27  ;;  %v2393_v17 = vunpack.c.h.b16 %v2374_v18  ;;  %v2392_v38 = vunpack.c.l.b16 %v2374_v18 }
 0x37a   : > { %2416 = vperm.xlu0 %3241, %v2393_v17   ;;  %2413 = vperm.xlu1 %3240, %v2392_v38   ;;  %v2391_v52 = vunpack.c.h.b16 %v2373_v23  ;;  %v2390_v22 = vunpack.c.l.b16 %v2373_v23  ;;  %v2177_v17 = vpop.permute.xlu1 %2176 }
 0x37e   : > { %2410 = vperm.xlu1 %3240, %v2391_v52   ;;  %2407 = vperm.xlu0 %3241, %v2390_v22  }
 0x385   : > { %v3084_v55 = vpop.f32.mrf.mxu1 }
 0x386   : > { %v2062_v15 = vadd.f32 %v3084_v55, %v4526_v32 }
 0x387   : > { %v2053_v39 = vpop.f32.mrf.mxu1 }
 0x388   : > { %v2054_v53 = vadd.f32 %v4526_v32, %v2053_v39  ;;  %v4547_v30 = vmul.f32 %v2140_v11, %v2062_v15 }
 0x389   : > { %v3085_v41 = vpop.f32.mrf.mxu1 }
 0x38a   : > { %v2065_v45 = vadd.f32 %v3085_v41, %v4526_v32  ;;  %v4552_v1 = vmul.f32 %v2129_v61, %v2054_v53  ;;  %v2188_v53 = vpop.permute.xlu1 %2187 }
 0x38b   : > { %v2056_v28 = vpop.f32.mrf.mxu1 }
 0x38c   : > { %v4549_v59 = vmul.f32 %v2144_v10, %v2065_v45  ;;  %v2057_v26 = vadd.f32 %v4526_v32, %v2056_v28 }
 0x38d   : > { %v3088_v20 = vpop.f32.mrf.mxu1 }
 0x38e   : > { %v2376_v25 = vpack.c.bf16 %v4549_v59, %v4547_v30  ;;  %v4556_v54 = vmul.f32 %v2133_v12, %v2057_v26  ;;  %v2078_v19 = vadd.f32 %v3088_v20, %v4526_v32  ;;  %v2173_v12 = vpop.permute.xlu0 %2172 }
 0x38f   : > { %v2069_v33 = vpop.f32.mrf.mxu1 }
 0x390   : > { %v2375_v60 = vpack.c.bf16 %v4556_v54, %v4552_v1  ;;  %v2397_v21 = vunpack.c.h.b16 %v2376_v25  ;;  %v2396_v56 = vunpack.c.l.b16 %v2376_v25  ;;  %v2070_v57 = vadd.f32 %v4526_v32, %v2069_v33 }
 0x391   : > { %v3089_v35 = vpop.f32.mrf.mxu1  ;;  %v4563_v40 = vmul.f32 %v2162_v24, %v2078_v19  ;;  %v842_v19 = vld [vmem:[%s802_s15 + $0x8] sm:$0xff] }
 0x392   : > { %v2081_v14 = vadd.f32 %v3089_v35, %v4526_v32  ;;  %2428 = vperm.xlu0 %3241, %v2397_v21   ;;  %2425 = vperm.xlu1 %3240, %v2396_v56   ;;  %v2395_v16 = vunpack.c.h.b16 %v2375_v60  ;;  %v2394_v23 = vunpack.c.l.b16 %v2375_v60  ;;  %v4568_v38 = vmul.f32 %v2151_v47, %v2070_v57  ;;  %v2184_v26 = vpop.permute.xlu0 %2183  ;;  %v841_v60 = vld [vmem:[%s802_s15] sm:$0xff] }
 0x393   : > { %v2072_v44 = vpop.f32.mrf.mxu1  ;;  %v2381_v35 = vpack.c.bf16 %v842_v19, %v841_v60 }
 0x394   : > { %v4565_v9 = vmul.f32 %v2166_v58, %v2081_v14  ;;  %v2073_v37 = vadd.f32 %v4526_v32, %v2072_v44 }
 0x395   : > { %v3092_v18 = vpop.f32.mrf.mxu1  ;;  %3095 = vmatpush3.bf16.msra.mxu0 %v2381_v35 }
 0x396   : > { %v2378_v52 = vpack.c.bf16 %v4565_v9, %v4563_v40  ;;  %v4572_v22 = vmul.f32 %v2155_v29, %v2073_v37  ;;  %2422 = vperm.xlu0 %3241, %v2395_v16   ;;  %2419 = vperm.xlu1 %3240, %v2394_v23   ;;  %v2094_v45 = vadd.f32 %v3092_v18, %v4526_v32  ;;  %v4977_v37 = vld [vmem:[#allocation36_spill] sm:$0xff]  ;;  %v4978_v16 = vld [vmem:[#allocation37_spill] sm:$0xff]  ;;  %v4983_v18 = vld [vmem:[#allocation35_spill] sm:$0xff] }
 0x397   : > { %v2085_v61 = vpop.f32.mrf.mxu1  ;;  %v2976_v23 = vmul.f32 -1.442695, %v4983_v18 }
 0x398   : > { %v2377_v10 = vpack.c.bf16 %v4572_v22, %v4568_v38  ;;  %v2401_v55 = vunpack.c.h.b16 %v2378_v52  ;;  %v2400_v39 = vunpack.c.l.b16 %v2378_v52  ;;  %v2086_v15 = vadd.f32 %v4526_v32, %v2085_v61 }
 0x399   : > { %v3093_v11 = vpop.f32.mrf.mxu1  ;;  %v2219_v21 = vmul.f32 %v2184_v26, %v2094_v45  ;;  %v2983_v45 = vmul.f32 -1.442695, %v4268_v6 }
 0x39a   : > { %v2097_v41 = vadd.f32 %v3093_v11, %v4526_v32  ;;  %2440 = vperm.xlu0 %3241, %v2401_v55   ;;  %2437 = vperm.xlu1 %3240, %v2400_v39   ;;  %v2399_v47 = vunpack.c.h.b16 %v2377_v10  ;;  %v2398_v20 = vunpack.c.l.b16 %v2377_v10  ;;  %v2217_v25 = vmul.f32 %v2173_v12, %v2086_v15  ;;  %v4984_v11 = vld [vmem:[#allocation29_spill] sm:$0xff] }
 0x39b   : > { %v2088_v29 = vpop.f32.mrf.mxu1 }
 0x39c   : > { %v2089_v28 = vadd.f32 %v4526_v32, %v2088_v29  ;;  %v2220_v33 = vmul.f32 %v2188_v53, %v2097_v41 }
 0x39e   : > { %v2218_v58 = vmul.f32 %v2177_v17, %v2089_v28  ;;  %2434 = vperm.xlu0 %3241, %v2399_v47   ;;  %2431 = vperm.xlu1 %3240, %v2398_v20   ;;  %v2380_v56 = vpack.c.bf16 %v2220_v33, %v2219_v21 }
 0x3a0   : > { %v2379_v24 = vpack.c.bf16 %v2218_v58, %v2217_v25  ;;  %v2405_v14 = vunpack.c.h.b16 %v2380_v56  ;;  %v2404_v44 = vunpack.c.l.b16 %v2380_v56 }
 0x3a2   : > { %v2403_v32 = vunpack.c.h.b16 %v2379_v24  ;;  %v2402_v57 = vunpack.c.l.b16 %v2379_v24 }
 0x3a4   : > { %2446 = vperm.xlu0 %3241, %v2403_v32   ;;  %2443 = vperm.xlu1 %3240, %v2402_v57  }
 0x3a8   : > { %2452 = vperm.xlu0 %3241, %v2405_v14   ;;  %2449 = vperm.xlu1 %3240, %v2404_v44  }
 0x3ac   : > { %1383 = vbcast.lane.b32.xlu0 %v4287_v0, 264  ;;  %1379 = vbcast.lane.b32.xlu1 %v4287_v0, 256  ;;  %v4979_v0 = vld [vmem:[#allocation38_spill] sm:$0xff] }
 0x3b0   : > { %1394 = vbcast.lane.b32.xlu0 %v4292_v34, 264  ;;  %1390 = vbcast.lane.b32.xlu1 %v4292_v34, 256  ;;  %v4980_v34 = vld [vmem:[#allocation39_spill] sm:$0xff] }
 0x3b4   : > { %1405 = vbcast.lane.b32.xlu0 %v4297_v48, 264  ;;  %1401 = vbcast.lane.b32.xlu1 %v4297_v48, 256  ;;  %v4981_v48 = vld [vmem:[#allocation34_spill] sm:$0xff] }
 0x3b8   : > { %1416 = vbcast.lane.b32.xlu0 %v4304_v7, 264  ;;  %1412 = vbcast.lane.b32.xlu1 %v4304_v7, 256  ;;  %v2968_v7 = vmul.f32 -1.442695, %v4981_v48 }
 0x3ba   : > { %3282 = vpow2.f32 %v2968_v7 }
 0x3bc   : > { %1427 = vbcast.lane.b32.xlu0 %v4977_v37, 264  ;;  %1423 = vbcast.lane.b32.xlu1 %v4977_v37, 256 }
 0x3c0   : > { %1438 = vbcast.lane.b32.xlu0 %v4978_v16, 264  ;;  %1434 = vbcast.lane.b32.xlu1 %v4978_v16, 256 }
 0x3c4   : > { %1449 = vbcast.lane.b32.xlu0 %v4979_v0, 264  ;;  %1445 = vbcast.lane.b32.xlu1 %v4979_v0, 256 }
 0x3c7   : > { %v3283_v61 = vpop.eup %3282 }
 0x3c8   : > { %1460 = vbcast.lane.b32.xlu0 %v4980_v34, 264  ;;  %1456 = vbcast.lane.b32.xlu1 %v4980_v34, 256  ;;  %v1326_v41 = vadd.f32 1.0, %v3283_v61 }
 0x3cc   : > { %2241 = vperm.xlu0 %3241, %v4540_v13   ;;  %2238 = vperm.xlu1 %3240, %v4536_v27   ;;  %v2970_v27 = vmul.f32 -1.442695, %v4156_v62  ;;  %v2974_v62 = vmul.f32 -1.442695, %v4192_v51  ;;  %v2978_v51 = vmul.f32 -1.442695, %v4212_v5 }
 0x3d0   : > { %2247 = vperm.xlu0 %3241, %v4533_v31   ;;  %2244 = vperm.xlu1 %3240, %v4531_v49   ;;  %v2969_v49 = vmul.f32 -1.442695, %v4145_v50 }
 0x3d2   : > { %3284 = vpow2.f32 %v2969_v49 }
 0x3d3   : > { %3286 = vpow2.f32 %v2970_v27 }
 0x3d4   : > { %2253 = vperm.xlu0 %3241, %v4556_v54   ;;  %2250 = vperm.xlu1 %3240, %v4552_v1   ;;  %v2973_v54 = vmul.f32 -1.442695, %v4181_v36  ;;  %v2980_v36 = vmul.f32 -1.442695, %v4228_v42  ;;  %v2982_v42 = vmul.f32 -1.442695, %v4252_v8 }
 0x3d8   : > { %2259 = vperm.xlu0 %3241, %v4549_v59   ;;  %2256 = vperm.xlu1 %3240, %v4547_v30   ;;  %v2971_v30 = vmul.f32 -1.442695, %v4163_v3  ;;  %v2972_v59 = vmul.f32 -1.442695, %v4161_v2  ;;  %v2975_v3 = vmul.f32 -1.442695, %v4210_v4 }
 0x3d9   : > { %v2977_v2 = vmul.f32 -1.442695, %v4190_v46  ;;  %v2979_v4 = vmul.f32 -1.442695, %v4230_v43 }
 0x3da   : > { %3288 = vpow2.f32 %v2971_v30 }
 0x3db   : > { %3290 = vpow2.f32 %v2972_v59 }
 0x3dc   : > { %2265 = vperm.xlu0 %3241, %v4572_v22   ;;  %2262 = vperm.xlu1 %3240, %v4568_v38   ;;  %3292 = vpow2.f32 %v2973_v54  ;;  %v2981_v22 = vmul.f32 -1.442695, %v4245_v63 }
 0x3dd   : > { %3294 = vpow2.f32 %v2976_v23 }
 0x3de   : > { %3296 = vpow2.f32 %v2974_v62 }
 0x3df   : > { %3298 = vpow2.f32 %v2975_v3  ;;  %v3285_v55 = vpop.eup %3284 }
 0x3e0   : > { %2271 = vperm.xlu0 %3241, %v4565_v9   ;;  %2268 = vperm.xlu1 %3240, %v4563_v40   ;;  %v4982_v9 = vlaneseq  ;;  %3300 = vpow2.f32 %v2977_v2  ;;  %v3287_v63 = vpop.eup %3286  ;;  %v1327_v20 = vadd.f32 1.0, %v3285_v55 }
 0x3e1   : > { %3302 = vpow2.f32 %v2980_v36 }
 0x3e2   : > { %v2286_v50 = vand.u32 127, %v4982_v9  ;;  %3304 = vpow2.f32 %v2981_v22 }
 0x3e3   : > { %3306 = vpow2.f32 %v2978_v51 }
 0x3e4   : > { %2277 = vperm.xlu0 %3241, %v2218_v58   ;;  %2274 = vperm.xlu1 %3240, %v2217_v25   ;;  %v2291_v52 = vadd.s32 4294967288, %v2286_v50  ;;  %v4637_v39 = vsub.s32 %v2286_v50, %v4984_v11  ;;  %3308 = vpow2.f32 %v2979_v4 }
 0x3e5   : > { %3310 = vpow2.f32 %v2982_v42 }
 0x3e6   : > { %v4640_v46 = vsub.s32 %v2291_v52, %v4984_v11  ;;  %3312 = vrcp.f32 %v1326_v41 }
 0x3e7   : > { %v3289_v5 = vpop.eup %3288  ;;  %3314 = vrcp.f32 %v1327_v20 }
 0x3e8   : > { %2283 = vperm.xlu0 %3241, %v2220_v33   ;;  %2280 = vperm.xlu1 %3240, %v2219_v21   ;;  %v1328_v33 = vadd.f32 1.0, %v3287_v63  ;;  %v1329_v58 = vadd.f32 1.0, %v3289_v5  ;;  %v3291_v60 = vpop.eup %3290 }
 0x3e9   : > { %v3293_v24 = vpop.eup %3292  ;;  %v1330_v16 = vadd.f32 1.0, %v3291_v60 }
 0x3ea   : > { %v3295_v44 = vpop.eup %3294  ;;  %3316 = vrcp.f32 %v1328_v33  ;;  %v1331_v48 = vadd.f32 1.0, %v3293_v24  ;;  %v4985_v24 = vld [vmem:[#allocation30_spill] sm:$0xff] }
 0x3eb   : > { %v3297_v0 = vpop.eup %3296  ;;  %3318 = vrcp.f32 %v1329_v58  ;;  %v1334_v4 = vadd.f32 1.0, %v3295_v44 }
 0x3ec   : > { %v3299_v7 = vpop.eup %3298  ;;  %3320 = vpow2.f32 %v2983_v45  ;;  %v1332_v18 = vadd.f32 1.0, %v3297_v0 }
 0x3ed   : > { %v3301_v30 = vpop.eup %3300  ;;  %3322 = vrcp.f32 %v1330_v16 }
 0x3ee   : > { %v3303_v9 = vpop.eup %3302  ;;  %3324 = vrcp.f32 %v1331_v48 }
 0x3ef   : > { %v3305_v23 = vpop.eup %3304  ;;  %3326 = vrcp.f32 %v1332_v18 }
 0x3f0   : > { %v3307_v3 = vpop.eup %3306 }
 0x3f1   : > { %v3309_v36 = vpop.eup %3308  ;;  %v1336_v45 = vadd.f32 1.0, %v3307_v3 }
 0x3f2   : > { %v3311_v51 = vpop.eup %3310 }
 0x3f3   : > { %v3313_v55 = vpop.eup %3312 }
 0x3f5   : > { %v4615_v31 = vpop.permute.xlu0 %2416  ;;  %v4618_v13 = vpop.permute.xlu1 %2413 }
 0x3f6   : > { %v2466_v47 = vrot.slane %v4618_v13, %v4637_v39  ;;  %v2470_v26 = vrot.slane %v4615_v31, %v4640_v46 }
 0x3f8   : > { %v2471_v14 = vsel %vm2296_vm2, %v2470_v26, %v2466_v47 }
 0x3f9   : > { %v2408_v1 = vpop.permute.xlu0 %2407  ;;  %v2411_v40 = vpop.permute.xlu1 %2410 }
 0x3fa   : > { %v2461_v53 = vrot.slane %v2411_v40, %v4640_v46  ;;  %v2457_v43 = vrot.slane %v2408_v1, %v4637_v39 }
 0x3fc   : > { %v2462_v6 = vsel %vm2296_vm2, %v2461_v53, %v2457_v43 }
 0x3fd   : > { %v2526_v37 = vsel %vm1574_vm3, %v2471_v14, %v2462_v6 }
 0x40d   : > { %v4626_v17 = vpop.permute.xlu0 %2428  ;;  %v4629_v38 = vpop.permute.xlu1 %2425 }
 0x40e   : > { %v2488_v19 = vrot.slane %v4626_v17, %v4640_v46  ;;  %v2484_v35 = vrot.slane %v4629_v38, %v4637_v39  ;;  %v1333_v17 = vadd.f32 1.0, %v3299_v7 }
 0x410   : > { %v2489_v49 = vsel %vm2296_vm2, %v2488_v19, %v2484_v35  ;;  %3328 = vrcp.f32 %v1333_v17  ;;  %v1338_v19 = vadd.f32 1.0, %v3303_v9 }
 0x411   : > { %v2423_v12 = vpop.permute.xlu0 %2422  ;;  %v2420_v10 = vpop.permute.xlu1 %2419  ;;  %3330 = vrcp.f32 %v1334_v4 }
 0x412   : > { %v2475_v28 = vrot.slane %v2420_v10, %v4637_v39  ;;  %v2479_v8 = vrot.slane %v2423_v12, %v4640_v46 }
 0x414   : > { %v2480_v56 = vsel %vm2296_vm2, %v2479_v8, %v2475_v28  ;;  %v1337_v8 = vadd.f32 1.0, %v3309_v36 }
 0x415   : > { %v4643_v15 = vpop.permute.xlu0 %2440  ;;  %v4647_v29 = vpop.permute.xlu1 %2437  ;;  %v2527_v34 = vsel %vm1576_vm4, %v2480_v56, %v2526_v37  ;;  %v4986_v56 = vld [vmem:[#allocation33_spill] sm:$0xff] }
 0x416   : > { %v2502_v59 = vrot.slane %v4647_v29, %v4637_v39  ;;  %v2506_v1 = vrot.slane %v4643_v15, %v4640_v46  ;;  %v2528_v50 = vsel %vm1578_vm5, %v2489_v49, %v2527_v34  ;;  %v1335_v15 = vadd.f32 1.0, %v3301_v30  ;;  %v3315_v29 = vpop.eup %3314 }
 0x417   : > { %v3317_v28 = vpop.eup %3316  ;;  %v1340_v34 = vadd.f32 1.0, %v3311_v51 }
 0x418   : > { %v2507_v22 = vsel %vm2296_vm2, %v2506_v1, %v2502_v59  ;;  %3332 = vrcp.f32 %v1335_v15  ;;  %v3319_v47 = vpop.eup %3318 }
 0x419   : > { %v2435_v25 = vpop.permute.xlu0 %2434  ;;  %v2432_v21 = vpop.permute.xlu1 %2431  ;;  %3334 = vrcp.f32 %v1336_v45 }
 0x41a   : > { %v2493_v32 = vrot.slane %v2432_v21, %v4637_v39  ;;  %v2497_v57 = vrot.slane %v2435_v25, %v4640_v46  ;;  %v3321_v58 = vpop.eup %3320  ;;  %3336 = vrcp.f32 %v1337_v8 }
 0x41b   : > { %v3323_v21 = vpop.eup %3322  ;;  %3338 = vrcp.f32 %v1338_v19 }
 0x41c   : > { %v2498_v31 = vsel %vm2296_vm2, %v2497_v57, %v2493_v32  ;;  %v1339_v57 = vadd.f32 1.0, %v3305_v23  ;;  %v3325_v14 = vpop.eup %3324 }
 0x41d   : > { %v2529_v62 = vsel %vm1580_vm6, %v2498_v31, %v2528_v50 }
 0x41e   : > { %v2530_v10 = vsel %vm1582_vm7, %v2507_v22, %v2529_v62  ;;  %3340 = vrcp.f32 %v1339_v57 }
 0x41f   : > { %v2444_v27 = vpop.permute.xlu1 %2443  ;;  %v2447_v13 = vpop.permute.xlu0 %2446  ;;  %3342 = vrcp.f32 %v1340_v34 }
 0x420   : > { %v2511_v54 = vrot.slane %v2444_v27, %v4637_v39  ;;  %v2515_v40 = vrot.slane %v2447_v13, %v4640_v46  ;;  %v1341_v27 = vadd.f32 1.0, %v3321_v58  ;;  %v3327_v13 = vpop.eup %3326 }
 0x421   : > { %v3329_v1 = vpop.eup %3328 }
 0x422   : > { %v2516_v38 = vsel %vm2296_vm2, %v2515_v40, %v2511_v54  ;;  %3344 = vrcp.f32 %v1341_v27 }
 0x423   : > { %v2450_v2 = vpop.permute.xlu1 %2449  ;;  %v2453_v52 = vpop.permute.xlu0 %2452  ;;  %v2531_v42 = vsel %vm1584_vm8, %v2516_v38, %v2530_v10 }
 0x424   : > { %v2520_v12 = vrot.slane %v2450_v2, %v4637_v39  ;;  %v2524_v61 = vrot.slane %v2453_v52, %v4640_v46  ;;  %v3331_v38 = vpop.eup %3330 }
 0x426   : > { %v2525_v63 = vsel %vm2296_vm2, %v2524_v61, %v2520_v12  ;;  %v3333_v12 = vpop.eup %3332 }
 0x427   : > { %v2532_v41 = vsel %vm1586_vm9, %v2525_v63, %v2531_v42  ;;  %v1380_v5 = vpop.permute.xlu1 %1379  ;;  %v1384_v53 = vpop.permute.xlu0 %1383 }
 0x428   : > { %v2533_v43 = vpack.c.b16 %v2532_v41, %v2532_v41  ;;  %v1462_v26 = vmul.f32 %v3313_v55, %v1380_v5  ;;  %v1463_v20 = vmul.f32 %v3315_v29, %v1384_v53  ;;  %v3335_v41 = vpop.eup %3334 }
 0x429   : > { %v3337_v45 = vpop.eup %3336 }
 0x42a   : > { %3097 = vmatmul.mubr.msk.bf16.vlgmr.msra.gmra.mxu0 %vm2369_vm10, %v2533_v43  ;;  %v1478_v44 = vmul.f32 %v1462_v26, %v4985_v24  ;;  %v1479_v37 = vmul.f32 %v1463_v20, %v4986_v56 }
 0x42b   : > { %v1391_v25 = vpop.permute.xlu1 %1390  ;;  %v1395_v33 = vpop.permute.xlu0 %1394 }
 0x42c   : > { %v1464_v60 = vmul.f32 %v3317_v28, %v1391_v25  ;;  %v1465_v6 = vmul.f32 %v3319_v47, %v1395_v33  ;;  %v1494_v54 = vsel %vm868_vm1, %v1478_v44, 0.0  ;;  %v1495_v40 = vsel %vm868_vm1, %v1479_v37, 0.0 }
 0x42d   : > { %v1496_v2 = vadd.f32 %v1495_v40, %v1494_v54 }
 0x42e   : > { %v1480_v35 = vmul.f32 %v1464_v60, %v4985_v24  ;;  %v1481_v32 = vmul.f32 %v1465_v6, %v4986_v56  ;;  %v3339_v6 = vpop.eup %3338 }
 0x42f   : > { %v1402_v16 = vpop.permute.xlu1 %1401  ;;  %v1406_v0 = vpop.permute.xlu0 %1405  ;;  %v1497_v5 = vrot.slane %v1496_v2, 4 }
 0x430   : > { %v1503_v48 = vsel %vm868_vm1, %v1480_v35, 0.0  ;;  %v1504_v7 = vsel %vm868_vm1, %v1481_v32, 0.0  ;;  %v1466_v49 = vmul.f32 %v3323_v21, %v1402_v16  ;;  %v1467_v31 = vmul.f32 %v3325_v14, %v1406_v0  ;;  %v3341_v57 = vpop.eup %3340 }
 0x431   : > { %v1505_v9 = vadd.f32 %v1504_v7, %v1503_v48  ;;  %v1498_v19 = vadd.f32 %v1497_v5, %v1496_v2  ;;  %v3343_v34 = vpop.eup %3342 }
 0x432   : > { %v1482_v30 = vmul.f32 %v1466_v49, %v4985_v24  ;;  %v1483_v59 = vmul.f32 %v1467_v31, %v4986_v56 }
 0x433   : > { %v1413_v50 = vpop.permute.xlu1 %1412  ;;  %v1417_v18 = vpop.permute.xlu0 %1416  ;;  %v1506_v61 = vrot.slane %v1505_v9, 4 }
 0x434   : > { %v1512_v23 = vsel %vm868_vm1, %v1482_v30, 0.0  ;;  %v1513_v62 = vsel %vm868_vm1, %v1483_v59, 0.0  ;;  %v1468_v17 = vmul.f32 %v3327_v13, %v1413_v50  ;;  %v1469_v3 = vmul.f32 %v3329_v1, %v1417_v18  ;;  %v3345_v30 = vpop.eup %3344 }
 0x435   : > { %v1514_v52 = vadd.f32 %v1513_v62, %v1512_v23  ;;  %v1507_v28 = vadd.f32 %v1506_v61, %v1505_v9  ;;  %v1499_v59 = vrot.slane %v1498_v19, 2 }
 0x436   : > { %v1484_v36 = vmul.f32 %v1468_v17, %v4985_v24  ;;  %v1485_v22 = vmul.f32 %v1469_v3, %v4986_v56 }
 0x437   : > { %v1424_v51 = vpop.permute.xlu1 %1423  ;;  %v1428_v10 = vpop.permute.xlu0 %1427  ;;  %v1515_v53 = vrot.slane %v1514_v52, 4  ;;  %v1508_v14 = vrot.slane %v1507_v28, 2 }
 0x438   : > { %v1521_v4 = vsel %vm868_vm1, %v1484_v36, 0.0  ;;  %v1522_v55 = vsel %vm868_vm1, %v1485_v22, 0.0  ;;  %v1470_v42 = vmul.f32 %v3331_v38, %v1424_v51  ;;  %v1471_v63 = vmul.f32 %v3333_v12, %v1428_v10 }
 0x439   : > { %v1523_v15 = vadd.f32 %v1522_v55, %v1521_v4  ;;  %v1516_v21 = vadd.f32 %v1515_v53, %v1514_v52  ;;  %v1509_v9 = vadd.f32 %v1508_v14, %v1507_v28  ;;  %v1500_v12 = vadd.f32 %v1499_v59, %v1498_v19 }
 0x43a   : > { %v1486_v43 = vmul.f32 %v1470_v42, %v4985_v24  ;;  %v1487_v29 = vmul.f32 %v1471_v63, %v4986_v56 }
 0x43b   : > { %v1524_v8 = vrot.slane %v1523_v15, 4  ;;  %v1435_v47 = vpop.permute.xlu1 %1434  ;;  %v1439_v26 = vpop.permute.xlu0 %1438  ;;  %v1517_v1 = vrot.slane %v1516_v21, 2  ;;  %v1510_v4 = vrot.slane %v1509_v9, 1 }
 0x43c   : > { %v1530_v20 = vsel %vm868_vm1, %v1486_v43, 0.0  ;;  %v1531_v25 = vsel %vm868_vm1, %v1487_v29, 0.0  ;;  %v1472_v33 = vmul.f32 %v3335_v41, %v1435_v47  ;;  %v1473_v58 = vmul.f32 %v3337_v45, %v1439_v26 }
 0x43d   : > { %v1532_v60 = vadd.f32 %v1531_v25, %v1530_v20  ;;  %v1525_v44 = vadd.f32 %v1524_v8, %v1523_v15  ;;  %v1518_v61 = vadd.f32 %v1517_v1, %v1516_v21  ;;  %v1501_v8 = vrot.slane %v1500_v12, 1 }
 0x43e   : > { %v1488_v35 = vmul.f32 %v1472_v33, %v4985_v24  ;;  %v1489_v32 = vmul.f32 %v1473_v58, %v4986_v56  ;;  %v1511_v26 = vadd.f32 %v1510_v4, %v1509_v9 }
 0x43f   : > { %v1533_v37 = vrot.slane %v1532_v60, 4  ;;  %v1446_v16 = vpop.permute.xlu1 %1445  ;;  %v1450_v0 = vpop.permute.xlu0 %1449  ;;  %v1526_v50 = vrot.slane %v1525_v44, 2  ;;  %v1519_v47 = vrot.slane %v1518_v61, 1  ;;  %v1502_v14 = vadd.f32 %v1501_v8, %v1500_v12 }
 0x440   : > { %v1539_v48 = vsel %vm868_vm1, %v1488_v35, 0.0  ;;  %v1540_v7 = vsel %vm868_vm1, %v1489_v32, 0.0  ;;  %v1474_v49 = vmul.f32 %v3339_v6, %v1446_v16  ;;  %v1475_v31 = vmul.f32 %v3341_v57, %v1450_v0 }
 0x441   : > { %v1534_v27 = vadd.f32 %v1533_v37, %v1532_v60  ;;  %v1541_v13 = vadd.f32 %v1540_v7, %v1539_v48  ;;  %v1527_v55 = vadd.f32 %v1526_v50, %v1525_v44  ;;  %v1520_v44 = vadd.f32 %v1519_v47, %v1518_v61 }
 0x442   : > { %v1490_v54 = vmul.f32 %v1474_v49, %v4985_v24  ;;  %v1491_v40 = vmul.f32 %v1475_v31, %v4986_v56 }
 0x443   : > { %v1535_v18 = vrot.slane %v1534_v27, 2  ;;  %v1542_v23 = vrot.slane %v1541_v13, 4  ;;  %v1457_v62 = vpop.permute.xlu1 %1456  ;;  %v1461_v17 = vpop.permute.xlu0 %1460 }
 0x444   : > { %v1548_v3 = vsel %vm868_vm1, %v1490_v54, 0.0  ;;  %v1549_v38 = vsel %vm868_vm1, %v1491_v40, 0.0  ;;  %v1476_v2 = vmul.f32 %v3343_v34, %v1457_v62  ;;  %v1477_v52 = vmul.f32 %v3345_v30, %v1461_v17 }
 0x445   : > { %v1543_v36 = vadd.f32 %v1542_v23, %v1541_v13  ;;  %v1550_v22 = vadd.f32 %v1549_v38, %v1548_v3  ;;  %v1536_v5 = vadd.f32 %v1535_v18, %v1534_v27  ;;  %v1575_v13 = vsel %vm1574_vm3, %v1511_v26, %v1502_v14 }
 0x446   : > { %v1492_v51 = vmul.f32 %v1476_v2, %v4985_v24  ;;  %v1493_v10 = vmul.f32 %v1477_v52, %v4986_v56  ;;  %v1528_v24 = vrot.slane %v1527_v55, 1  ;;  %v1577_v54 = vsel %vm1576_vm4, %v1520_v44, %v1575_v13 }
 0x447   : > { %v1544_v42 = vrot.slane %v1543_v36, 2  ;;  %v1551_v63 = vrot.slane %v1550_v22, 4  ;;  %v2239_v15 = vpop.permute.xlu1 %2238  ;;  %v2242_v41 = vpop.permute.xlu0 %2241  ;;  %v1537_v58 = vrot.slane %v1536_v5, 1 }
 0x448   : > { %v1557_v53 = vsel %vm868_vm1, %v1492_v51, 0.0  ;;  %v1558_v43 = vsel %vm868_vm1, %v1493_v10, 0.0  ;;  %v2290_v60 = vrot.slane %v2239_v15, %v4637_v39  ;;  %v2295_v57 = vrot.slane %v2242_v41, %v4640_v46  ;;  %v4987_v15 = vld [vmem:[#allocation31_spill] sm:$0xff] }
 0x449   : > { %v1545_v29 = vadd.f32 %v1544_v42, %v1543_v36  ;;  %v1552_v45 = vadd.f32 %v1551_v63, %v1550_v22  ;;  %v1559_v28 = vadd.f32 %v1558_v43, %v1557_v53  ;;  %v1529_v37 = vadd.f32 %v1528_v24, %v1527_v55 }
 0x44a   : > { %v1538_v49 = vadd.f32 %v1537_v58, %v1536_v5  ;;  %v2297_v1 = vsel %vm2296_vm2, %v2295_v57, %v2290_v60 }
 0x44b   : > { %v1553_v20 = vrot.slane %v1552_v45, 2  ;;  %v1560_v56 = vrot.slane %v1559_v28, 4  ;;  %v2245_v25 = vpop.permute.xlu1 %2244  ;;  %v2248_v33 = vpop.permute.xlu0 %2247  ;;  %v1546_v21 = vrot.slane %v1545_v29, 1  ;;  %v1579_v18 = vsel %vm1578_vm5, %v1529_v37, %v1577_v54 }
 0x44c   : > { %v2301_v6 = vrot.slane %v2245_v25, %v4637_v39  ;;  %v2305_v19 = vrot.slane %v2248_v33, %v4640_v46  ;;  %v1581_v52 = vsel %vm1580_vm6, %v1538_v49, %v1579_v18 }
 0x44d   : > { %v1554_v35 = vadd.f32 %v1553_v20, %v1552_v45  ;;  %v1561_v32 = vadd.f32 %v1560_v56, %v1559_v28  ;;  %v1547_v30 = vadd.f32 %v1546_v21, %v1545_v29 }
 0x44e   : > { %v2306_v34 = vsel %vm2296_vm2, %v2305_v19, %v2301_v6 }
 0x44f   : > { %v1555_v16 = vrot.slane %v1554_v35, 1  ;;  %v1562_v0 = vrot.slane %v1561_v32, 2  ;;  %v2251_v48 = vpop.permute.xlu1 %2250  ;;  %v2254_v7 = vpop.permute.xlu0 %2253  ;;  %v2361_v9 = vsel %vm1574_vm3, %v2306_v34, %v2297_v1  ;;  %v1583_v22 = vsel %vm1582_vm7, %v1547_v30, %v1581_v52 }
 0x450   : > { %v2310_v31 = vrot.slane %v2251_v48, %v4637_v39  ;;  %v2314_v27 = vrot.slane %v2254_v7, %v4640_v46 }
 0x451   : > { %v1563_v59 = vadd.f32 %v1562_v0, %v1561_v32  ;;  %v1556_v40 = vadd.f32 %v1555_v16, %v1554_v35 }
 0x452   : > { %v2315_v50 = vsel %vm2296_vm2, %v2314_v27, %v2310_v31 }
 0x453   : > { %v1564_v23 = vrot.slane %v1563_v59, 1  ;;  %v2362_v62 = vsel %vm1576_vm4, %v2315_v50, %v2361_v9  ;;  %v2257_v17 = vpop.permute.xlu1 %2256  ;;  %v2260_v3 = vpop.permute.xlu0 %2259  ;;  %v1585_v61 = vsel %vm1584_vm8, %v1556_v40, %v1583_v22 }
 0x454   : > { %v2319_v38 = vrot.slane %v2257_v17, %v4637_v39  ;;  %v2323_v2 = vrot.slane %v2260_v3, %v4640_v46 }
 0x455   : > { %v1565_v36 = vadd.f32 %v1564_v23, %v1563_v59 }
 0x456   : > { %v2324_v12 = vsel %vm2296_vm2, %v2323_v2, %v2319_v38 }
 0x457   : > { %v2363_v51 = vsel %vm1578_vm5, %v2324_v12, %v2362_v62  ;;  %v2263_v10 = vpop.permute.xlu1 %2262  ;;  %v2266_v4 = vpop.permute.xlu0 %2265  ;;  %v1587_v55 = vsel %vm1586_vm9, %v1565_v36, %v1585_v61 }
 0x458   : > { %v2328_v42 = vrot.slane %v2263_v10, %v4637_v39  ;;  %v2332_v63 = vrot.slane %v2266_v4, %v4640_v46  ;;  %v4743_v41 = vadd.f32 %v1587_v55, %v4987_v15 }
 0x45a   : > { %v2333_v5 = vsel %vm2296_vm2, %v2332_v63, %v2328_v42  ;;  %v1591_v53 = vsel %vm868_vm1, %v4743_v41, 0.0  ;;  %v1596_v43 = vmul.f32 %v4743_v41, %v4743_v41 }
 0x45b   : > { %v2364_v29 = vsel %vm1580_vm6, %v2333_v5, %v2363_v51  ;;  %v2269_v45 = vpop.permute.xlu1 %2268  ;;  %v2272_v28 = vpop.permute.xlu0 %2271  ;;  %1592 = vadd.xlane.f32.xlu1 %v1591_v53 }
 0x45c   : > { %v2337_v8 = vrot.slane %v2269_v45, %v4637_v39  ;;  %v2341_v47 = vrot.slane %v2272_v28, %v4640_v46  ;;  %v1597_v26 = vsel %vm868_vm1, %v1596_v43, 0.0 }
 0x45d   : > { %1598 = vadd.xlane.f32.xlu0 %v1597_v26 }
 0x45e   : > { %v2342_v24 = vsel %vm2296_vm2, %v2341_v47, %v2337_v8 }
 0x45f   : > { %v2275_v20 = vpop.permute.xlu1 %2274  ;;  %v2278_v56 = vpop.permute.xlu0 %2277  ;;  %v2365_v25 = vsel %vm1582_vm7, %v2342_v24, %v2364_v29 }
 0x460   : > { %v2346_v33 = vrot.slane %v2275_v20, %v4637_v39  ;;  %v2350_v58 = vrot.slane %v2278_v56, %v4640_v46 }
 0x462   : > { %v2351_v60 = vsel %vm2296_vm2, %v2350_v58, %v2346_v33 }
 0x463   : > { %v2281_v6 = vpop.permute.xlu1 %2280  ;;  %v2284_v19 = vpop.permute.xlu0 %2283  ;;  %v2366_v21 = vsel %vm1584_vm8, %v2351_v60, %v2365_v25 }
 0x464   : > { %v2355_v35 = vrot.slane %v2281_v6, %v4637_v39  ;;  %v2359_v32 = vrot.slane %v2284_v19, %v4640_v46 }
 0x466   : > { %v2360_v57 = vsel %vm2296_vm2, %v2359_v32, %v2355_v35 }
 0x467   : > { %v2367_v14 = vsel %vm1586_vm9, %v2360_v57, %v2366_v21 }
 0x468   : > { %v2370_v44 = vsel %vm2369_vm10, %v2367_v14, 0.0 }
 0x469   : > { %2371 = vadd.xlane.f32.xlu0 %v2370_v44 }
 0x46a   : > { %3525 = shalt.err (!%p3522_p13)
}
 0x46b   : > { %s3526_s14 = scalar_lea.hbm %s4773_s3, 2048  ;;  %s3530_s22 = scalar_lea.hbm %s4989_s13, 8192 }
 0x46c   : > { %p3527_p9 = scmp.ne.s32.totalorder %s4773_s3, %s3526_s14  ;;  %p3531_p4 = scmp.lt.s32.totalorder %s4773_s3, %s4989_s13 }
 0x46d   : > { %p3532_p11 = scmp.lt.s32.totalorder %s3530_s22, %s3526_s14 }
 0x46e   : > { %p3528_p3 = pnand %p3527_p9, %p3895_p1 }
 0x46f   : > { %p3533_p0 = por %p3532_p11, %p3531_p4 }
 0x470   : > { %p3529_p2 = pneg %p3528_p3 }
 0x472   : > { %p3534_p5 = pnand %p3533_p0, %p3529_p2 }
 0x474   : > { %3537 = shalt.err (!%p3534_p5)
}
 0x475   : > { %s3672_s12 = smov 128   ;;  %s3673_s8 = smov 8   ;;  %vm2581_vm11 = vcmask 15360   ;;  %v3350_v50 = vld [vmem:[%s4972_s9] sm:$0xf]  ;;  %v4992_v18 = vld [vmem:[#allocation32_spill] sm:$0xff] }
 0x476   : > { %3121 = dma.vmem_to_hbm [thread:$0]  (%p3895_p1), %s4768_s11, 2048, %s4773_s3, %s2589_s24, %s3672_s12, %s3672_s12, %s3673_s8   ;;  %v1610_v23 = vrot.slane %v3350_v50, %v4992_v18  ;;  %v4993_v17 = vsub.s32 1, %v4984_v11 }
 0x477   : > { %s4990_s1 = sld [smem:[#allocation44_spill]]  ;;  %s2998_s22 = sshll.u32 %s3642_s28, 1  ;;  %v3351_v22 = vld [vmem:[%s4009_s2] sm:$0xff] }
 0x478   : > { %s4991_s24 = sld [smem:[#allocation56_spill]]  ;;  %v1615_v3 = vrot.slane %v3350_v50, %v4993_v17  ;;  %s766_s10 = scalar_lea.vmem [#allocation13], %s2932_s6 }
 0x479   : > { %s2612_s12 = sshll.u32 %s766_s10, 4  ;;  %s4994_s28 = sld [smem:[#allocation54_spill]]  ;;  %s2613_s12 = int_to_ptr.vmem [resolvable:$true] %s2612_s12 }
 0x47a   : > { %s3538_s11 = scalar_lea.vmem %s2613_s12, 128 }
 0x47b   : > { %p3539_p10 = scmp.ne.s32.totalorder %s2613_s12, %s3538_s11 }
 0x47d   : > { %s810_s4 = scalar_lea.vmem %s4990_s1, %s3995_s23  ;;  %p3540_p7 = pnand %p3539_p10, %p3895_p1 }
 0x47e   : > { %v843_v13 = vld [vmem:[%s810_s4] sm:$0xff]  ;;  %s819_s14 = scalar_lea.vmem %s4991_s24, %s3995_s23  ;;  %s2608_s23 = sadd.s32 %s3638_s27, %s2998_s22 }
 0x47f   : > { %s2999_s19 = sshll.u32 %s2608_s23, 7  ;;  %s4995_s20 = smov %s4994_s28 }
 0x480   : > { %s2610_s1 = scalar_lea.hbm %s4994_s28, %s2999_s19  ;;  %s2584_s4 = scalar_lea.sflag [#allocation4], %s3947_s16 }
 0x481   : > { %p3541_p8 = pneg %p3540_p7  ;;  %s3674_s27 = smov [#allocation13]  }
 0x482   : > { %s3542_s3 = sshll.u32 %s3674_s27, 4  ;;  %s3543_s3 = int_to_ptr.vmem [resolvable:$false] %s3542_s3 }
 0x483   : > { %s3544_s6 = scalar_lea.vmem %s3543_s3, 256  ;;  %p3545_p12 = scmp.lt.s32.totalorder %s2613_s12, %s3543_s3 }
 0x484   : > { %p3546_p13 = scmp.lt.s32.totalorder %s3544_s6, %s3538_s11 }
 0x486   : > { %p3547_p9 = por %p3546_p13, %p3545_p12 }
 0x488   : > { %p3548_p3 = pnand %p3547_p9, %p3541_p8 }
 0x4e4   : > { %v1593_v39 = vpop.xlane.xlu1 %1592 }
 0x4e5   : > { %v1595_v46 = vmul.f32 0.03125, %v1593_v39 }
 0x4e6   : > { %v1599_v37 = vpop.xlane.xlu0 %1598 }
 0x4e7   : > { %v1601_v16 = vmul.f32 %v1595_v46, %v1595_v46  ;;  %v1600_v0 = vmul.f32 0.03125, %v1599_v37  ;;  %v1603_v40 = vsub.f32 %v4743_v41, %v1595_v46 }
 0x4e9   : > { %v1602_v34 = vsub.f32 %v1600_v0, %v1601_v16 }
 0x4ea   : > { %v2571_v48 = vpop.f32.mrf.mxu0 }
 0x4eb   : > { %v1604_v7 = vadd.f32 1e-05, %v1602_v34 }
 0x4ec   : > { %v3098_v49 = vpop.f32.mrf.mxu0 }
 0x4ed   : > { %3346 = vrsqrt.f32 %v1604_v7 }
 0x4ee   : > { %v2574_v31 = vpop.f32.mrf.mxu0 }
 0x4f0   : > { %v3099_v27 = vpop.f32.mrf.mxu0 }
 0x4f2   : > { %v2372_v30 = vpop.xlane.xlu0 %2371 }
 0x4f3   : > { %v2577_v59 = vmul.f32 %v2372_v30, %v843_v13 }
 0x4f5   : > { %v2578_v1 = vsub.f32 %v2577_v59, %v2571_v48 }
 0x4f7   : > { %v2579_v54 = vmul.f32 0.0625, %v2578_v1 }
 0x4f9   : > { %v2580_v9 = vadd.f32 %v2579_v54, %v843_v13 }
 0x4fa   : > { %v3347_v62 = vpop.eup %3346 }
 0x4fb   : > { %v1606_v38 = vmul.f32 %v3347_v62, %v1603_v40  ;;  %2582 = vst.msk [vmem:[%s819_s14] sm:$0xff] %vm2581_vm11, %v2580_v9 }
 0x4fd   : > { %v1611_v2 = vmul.f32 %v1610_v23, %v1606_v38 }
 0x4ff   : > { %v1616_v52 = vadd.f32 %v1615_v3, %v1611_v2 }
 0x501   : > { %v1617_v36 = vmax.f32 %v1616_v52, 0.0 }
 0x503   : > { %v1618_v12 = vadd.f32 %v3351_v22, %v1617_v36 }
 0x505   : > { %1931 = vst.msk [vmem:[%s766_s10] sm:$0xff] %vm868_vm1, %v1618_v12 }
 0x506   : > { %3551 = shalt.err (!%p3548_p3)
}
 0x507   : > { %s3552_s2 = scalar_lea.hbm %s2610_s1, 128  ;;  %s3556_s14 = scalar_lea.hbm %s4995_s20, 512 }
 0x508   : > { %p3553_p2 = scmp.ne.s32.totalorder %s2610_s1, %s3552_s2  ;;  %p3557_p0 = scmp.lt.s32.totalorder %s2610_s1, %s4995_s20 }
 0x509   : > { %p3558_p5 = scmp.lt.s32.totalorder %s3556_s14, %s3552_s2 }
 0x50a   : > { %p3554_p4 = pnand %p3553_p2, %p3895_p1 }
 0x50b   : > { %p3559_p10 = por %p3558_p5, %p3557_p0 }
 0x50c   : > { %p3555_p11 = pneg %p3554_p4 }
 0x50e   : > { %p3560_p7 = pnand %p3559_p10, %p3555_p11 }
 0x510   : > { %3563 = shalt.err (!%p3560_p7)
}
 0x511   : > { %3120 = dma.vmem_to_hbm [thread:$0]  (%p3895_p1), %s2613_s12, 128, %s2610_s1, %s2584_s4  }
 0x512 PF: > { %s4996_s22 = sld [smem:[#allocation23_spill]]  ;;  %p3160_p8 = scmp.ge.s32.totalorder %s3654_s30, 2 }
 0x514   : > { %p3145_p12 = pnand %p3160_p8, %p3820_p6 }
 0x516   : > { %p3146_p13 = pneg %p3145_p12 }
 0x518   : > { %s2646_s19 = sand.u32 1, %s4996_s22  }
 0x519   : > { %s2647_s10 = scalar_lea.sflag [#allocation4], %s2646_s19 }
 0x51a   : > { %3617 = dma.done.wait (%p3146_p13), %s2647_s10, 128  }
 0x51b   : > { %3619 = vsyncadd (%p3146_p13), %s2647_s10, 4294967168  ;;  %s2656_s8 = scalar_lea.sflag [#allocation15], %s2646_s19 }
 0x51c   : > { %3621 = dma.done.wait (%p3146_p13), %s2656_s8, 2048  }
 0x51d   : > { %3623 = vsyncadd (%p3146_p13), %s2656_s8, 4294965248  ;;  %s42_s30 = sadd.s32 1, %s3654_s30   ;;  %s4998_s18 = sld [smem:[#allocation28_spill]] }
 0x51e   : > { %p39_p9 = scmp.ge.s32.totalorder %s42_s30, 6   ;;  %s4999_s12 = sld [smem:[#allocation25_spill]] }
 0x51f   : > { %s5000_s21 = sld [smem:[#allocation27_spill]]  ;;  %s5001_s24 = smov %s3630_s25 }
 0x520   : > { %s5002_s25 = smov %s3634_s26  ;;  %s5004_s27 = smov %s3646_s29 }
 0x521   : > { %s5005_s28 = smov %s3650_s0  ;;  %41 = sbr.rel (!%p39_p9) target bundleno = 31 (0x1f), region = 195 }
 0x523   : > { %s5003_s26 = smov %s4998_s18 }
 0x524   : > { %s5006_s29 = smov %s4999_s12 }
 0x525   : > { %s5007_s0 = smov %s5000_s21 }
 0x526   :  { %2672 = vsyncpa [#allocation3], 1 }
 0x527   :  { %2674 = vsyncpa [#allocation3 + $0x1], 1 }
 0x528   :  { %2675 = vsyncpa [#allocation6], 1 }
 0x529   :  { %2677 = vsyncpa [#allocation6 + $0x1], 1 }
 0x52a   :  { %2678 = vsyncpa [#allocation9], 1 }
 0x52b   :  { %2679 = vsyncpa [#allocation12], 1 }
 0x52c   :  { %2680 = vsyncpa [#allocation4], 1 }
 0x52d   :  { %2682 = vsyncpa [#allocation4 + $0x1], 1 }
 0x52e   :  { %2683 = vsyncpa [#allocation15], 1 }
 0x52f   :  { %2685 = vsyncpa [#allocation15 + $0x1], 1 }

</bundles_post_ra>
